<compile_context>
chip_gen: v6e
topology: v6e:2x2x1
jax: 0.10.0
libtpu: 0.0.40
codegen_flags: <defaults>
</compile_context>

<pallas_src>
import math

import jax
import jax.numpy as jnp
from jax import lax
from jax.experimental import pallas as pl
from jax.experimental.pallas import tpu as pltpu

BN_EPS = 1e-5
SOFTMAX_EPS = 1e-16
NEG_SLOPE = 0.2
LANE = 128


# ----------------------------- kernel helpers ------------------------------

def _linear_bn(x, w, gamma, beta):
    """Linear + BatchNorm1d (training mode: batch stats, biased variance).

    The Linear bias is omitted on purpose: (y - mean(y)) is invariant to a
    per-feature bias, so under batch-stat BN it cancels exactly."""
    y = jnp.dot(x, w, preferred_element_type=jnp.float32)
    mean = jnp.mean(y, axis=0, keepdims=True)
    c = y - mean
    var = jnp.mean(c * c, axis=0, keepdims=True)
    scale = gamma * lax.rsqrt(var + BN_EPS)
    return c * scale + beta


def _scatter_sum(dst_oh, v):
    """[E,N]^T @ [E,H] -> [N,H] without materializing the transpose."""
    return lax.dot_general(
        dst_oh, v,
        dimension_numbers=(((0,), (0,)), ((), ())),
        preferred_element_type=jnp.float32)


def _gat_conv(h, e, src_oh, dst_oh, w_fc, b_fc, w_ai, w_aj, w_ae, b_a):
    """GAT-style conv with edge features.  Gathers/scatters run as MXU
    matmuls against in-kernel one-hot matrices."""
    x = jnp.dot(h, w_fc, preferred_element_type=jnp.float32) + b_fc      # [N, H]

    # Attention projections at node granularity (N <= E), gathered afterwards:
    #   dst_oh @ (x @ w_ai) == (dst_oh @ x) @ w_ai  but much cheaper.
    xi_p = jnp.dot(x, w_ai, preferred_element_type=jnp.float32)          # [N, H]
    xj_p = jnp.dot(x, w_aj, preferred_element_type=jnp.float32)          # [N, H]
    e_p = jnp.dot(e, w_ae, preferred_element_type=jnp.float32) + b_a     # [E, H]

    x_j = jnp.dot(src_oh, x, preferred_element_type=jnp.float32)         # [E, H]
    z = (jnp.dot(dst_oh, xi_p, preferred_element_type=jnp.float32)
         + jnp.dot(src_oh, xj_p, preferred_element_type=jnp.float32)
         + e_p)                                                          # [E, H]
    z = jnp.where(z > 0, z, NEG_SLOPE * z)                               # leaky_relu

    # Segment softmax over edges sharing a target node.  Shift by the global
    # max (softmax is shift-invariant; numerically stable).  The denominator
    # is constant per target segment, so scatter numerator / denominator
    # separately and divide once per node instead of once per edge.
    ez = jnp.exp(z - jnp.max(z))
    num = _scatter_sum(dst_oh, ez * x_j)                                 # [N, H]
    den = _scatter_sum(dst_oh, ez)                                       # [N, H]
    return num * pl.reciprocal(den + SOFTMAX_EPS, approx=True)           # [N, H]


# --------------------------------- kernel -----------------------------------

def encoder_kernel(
    feat_ref, eattr_ref, src_idx_ref, dst_idx_ref,
    wn_ref, gn_ref, betan_ref,
    we_ref, ge_ref, betae_ref,
    w1fc_ref, b1fc_ref, w1ai_ref, w1aj_ref, w1ae_ref, b1a_ref,
    w2fc_ref, b2fc_ref, w2ai_ref, w2aj_ref, w2ae_ref, b2a_ref,
    out_ref,
):
    n_nodes = feat_ref.shape[0]
    n_edges = src_idx_ref.shape[0]

    # Build gather/scatter one-hots in-kernel from int32 edge indices
    # (VPU compare) — no [E,N] arrays ever cross HBM.
    node_iota = lax.broadcasted_iota(jnp.int32, (n_edges, n_nodes), 1)
    src_oh = (node_iota == src_idx_ref[...]).astype(jnp.float32)          # [E, N]
    dst_oh = (node_iota == dst_idx_ref[...]).astype(jnp.float32)          # [E, N]

    # features = bn(fc_node(cat([pos, x], -1)))   (concat done in wrapper glue)
    h = _linear_bn(feat_ref[...], wn_ref[...], gn_ref[...], betan_ref[...])
    # edge_attr = be(fc_edge(edge_attr))
    e = _linear_bn(eattr_ref[...], we_ref[...], ge_ref[...], betae_ref[...])

    # features = features + conv1(features, edge_index, edge_attr)
    h = h + _gat_conv(h, e, src_oh, dst_oh,
                      w1fc_ref[...], b1fc_ref[...], w1ai_ref[...],
                      w1aj_ref[...], w1ae_ref[...], b1a_ref[...])
    # features = features + conv2(features, edge_index, edge_attr)
    h = h + _gat_conv(h, e, src_oh, dst_oh,
                      w2fc_ref[...], b2fc_ref[...], w2ai_ref[...],
                      w2aj_ref[...], w2ae_ref[...], b2a_ref[...])
    out_ref[...] = h


# --------------------------------- wrapper -----------------------------------

def _round_up(x, m):
    return (x + m - 1) // m * m


def _pad_cols(a, cols):
    return jnp.pad(a, ((0, 0), (0, cols - a.shape[1])))


def _pad_2d(a, rows, cols):
    return jnp.pad(a, ((0, rows - a.shape[0]), (0, cols - a.shape[1])))


def encoder_forward(params, pos, x, edge_index, edge_attr, ptr):
    features = jnp.concatenate([pos, x], axis=-1).astype(jnp.float32)    # glue
    n_nodes = features.shape[0]
    n_edges = edge_index.shape[1]
    hidden = params["w_node"].shape[1]
    hidden_e = params["w_edge"].shape[1]

    # Lane-dense internal widths: pad hidden dims to a multiple of 128.  All
    # padded weight/bias/BN columns are zero, so padded feature columns stay
    # exactly zero through the whole forward pass (sliced off at the end).
    hp = _round_up(hidden, LANE)
    hep = _round_up(hidden_e, LANE)

    src_idx = edge_index[0].astype(jnp.int32).reshape(n_edges, 1)
    dst_idx = edge_index[1].astype(jnp.int32).reshape(n_edges, 1)

    inputs = [
        features, edge_attr.astype(jnp.float32), src_idx, dst_idx,
        _pad_cols(params["w_node"], hp),
        _pad_cols(params["g_node"], hp),
        _pad_cols(params["beta_node"], hp),
        _pad_cols(params["w_edge"], hep),
        _pad_cols(params["g_edge"], hep),
        _pad_cols(params["beta_edge"], hep),
    ]
    for i in (1, 2):
        inputs += [
            _pad_2d(params[f"w{i}_fc"], hp, hp),
            _pad_cols(params[f"b{i}_fc"], hp),
            _pad_2d(params[f"w{i}_ai"], hp, hp),
            _pad_2d(params[f"w{i}_aj"], hp, hp),
            _pad_2d(params[f"w{i}_ae"], hep, hp),
            _pad_cols(params[f"b{i}_a"], hp),
        ]

    out = pl.pallas_call(
        encoder_kernel,
        out_shape=jax.ShapeDtypeStruct((n_nodes, hp), jnp.float32),
        in_specs=[pl.BlockSpec(memory_space=pltpu.MemorySpace.VMEM)] * len(inputs),
        out_specs=pl.BlockSpec(memory_space=pltpu.MemorySpace.VMEM),
        compiler_params=pltpu.CompilerParams(vmem_limit_bytes=64 * 1024 * 1024),
    )(*inputs)

    out = out[:, :hidden]

    # per-graph split by ptr (ptr is expected to be static Python ints, so no
    # device->host sync here; the slices are lazy views of the packed result)
    ptr = [int(p) for p in ptr]
    return [out[ptr[i]:ptr[i + 1]] for i in range(len(ptr) - 1)]


# ------------------------------ parameter init -------------------------------

def init_params(key, input_node_dim, hidden_node_dim, input_edge_dim, hidden_edge_dim):
    ks = iter(jax.random.split(key, 16))

    def lin(din, dout):
        bound = 1.0 / math.sqrt(din)
        w = jax.random.uniform(next(ks), (din, dout), jnp.float32, -bound, bound)
        b = jax.random.uniform(next(ks), (1, dout), jnp.float32, -bound, bound)
        return w, b

    p = {}
    # NOTE: b_node / b_edge are kept for parameter parity with the torch module
    # but are unused: training-mode BatchNorm cancels the preceding bias exactly.
    p["w_node"], p["b_node"] = lin(input_node_dim, hidden_node_dim)
    p["g_node"] = jnp.ones((1, hidden_node_dim), jnp.float32)      # BN default init
    p["beta_node"] = jnp.zeros((1, hidden_node_dim), jnp.float32)
    p["w_edge"], p["b_edge"] = lin(input_edge_dim, hidden_edge_dim)
    p["g_edge"] = jnp.ones((1, hidden_edge_dim), jnp.float32)
    p["beta_edge"] = jnp.zeros((1, hidden_edge_dim), jnp.float32)

    for i in (1, 2):
        p[f"w{i}_fc"], p[f"b{i}_fc"] = lin(hidden_node_dim, hidden_node_dim)
        fan_in = 2 * hidden_node_dim + hidden_edge_dim
        bound = 1.0 / math.sqrt(fan_in)
        wa = jax.random.uniform(next(ks), (fan_in, hidden_node_dim),
                                jnp.float32, -bound, bound)
        p[f"w{i}_ai"] = wa[:hidden_node_dim]                      # multiplies x_i
        p[f"w{i}_aj"] = wa[hidden_node_dim:2 * hidden_node_dim]   # multiplies x_j
        p[f"w{i}_ae"] = wa[2 * hidden_node_dim:]                  # multiplies edge_attr
        p[f"b{i}_a"] = jax.random.uniform(next(ks), (1, hidden_node_dim),
                                          jnp.float32, -bound, bound)
    return p


# ----------------------------------- main ------------------------------------

if __name__ == "__main__":
    key = jax.random.PRNGKey(0)
    N, E = 16, 32
    pos_dim, x_dim = 2, 2
    input_node_dim = pos_dim + x_dim       # cat([pos, x], -1)
    hidden_node_dim = 32
    input_edge_dim = 4
    hidden_edge_dim = 16

    k_pos, k_x, k_ei, k_ea, k_p = jax.random.split(key, 5)
    pos = jax.random.normal(k_pos, (N, pos_dim), jnp.float32)
    xfeat = jax.random.normal(k_x, (N, x_dim), jnp.float32)
    edge_index = jax.random.randint(k_ei, (2, E), 0, N)            # [2, E] (src, dst)
    edge_attr = jax.random.normal(k_ea, (E, input_edge_dim), jnp.float32)
    ptr = [0, 8, 16]                                               # two graphs of 8 nodes

    params = init_params(k_p, input_node_dim, hidden_node_dim,
                         input_edge_dim, hidden_edge_dim)

    embs = encoder_forward(params, pos, xfeat, edge_index, edge_attr, ptr)
    for emb in embs:
        jax.block_until_ready(emb)
    assert len(embs) == len(ptr) - 1
    assert embs[0].shape == (8, hidden_node_dim)
    assert embs[1].shape == (8, hidden_node_dim)
    print("KERNEL_OK")
</pallas_src>

<mosaic_0001>
module attributes {stable_mosaic.version = 11 : i64} {
  func.func @encoder_kernel(%arg0: memref<16x4xf32, #tpu.memory_space<vmem>>, %arg1: memref<32x4xf32, #tpu.memory_space<vmem>>, %arg2: memref<32x1xi32, #tpu.memory_space<vmem>>, %arg3: memref<32x1xi32, #tpu.memory_space<vmem>>, %arg4: memref<4x128xf32, #tpu.memory_space<vmem>>, %arg5: memref<1x128xf32, #tpu.memory_space<vmem>>, %arg6: memref<1x128xf32, #tpu.memory_space<vmem>>, %arg7: memref<4x128xf32, #tpu.memory_space<vmem>>, %arg8: memref<1x128xf32, #tpu.memory_space<vmem>>, %arg9: memref<1x128xf32, #tpu.memory_space<vmem>>, %arg10: memref<128x128xf32, #tpu.memory_space<vmem>>, %arg11: memref<1x128xf32, #tpu.memory_space<vmem>>, %arg12: memref<128x128xf32, #tpu.memory_space<vmem>>, %arg13: memref<128x128xf32, #tpu.memory_space<vmem>>, %arg14: memref<128x128xf32, #tpu.memory_space<vmem>>, %arg15: memref<1x128xf32, #tpu.memory_space<vmem>>, %arg16: memref<128x128xf32, #tpu.memory_space<vmem>>, %arg17: memref<1x128xf32, #tpu.memory_space<vmem>>, %arg18: memref<128x128xf32, #tpu.memory_space<vmem>>, %arg19: memref<128x128xf32, #tpu.memory_space<vmem>>, %arg20: memref<128x128xf32, #tpu.memory_space<vmem>>, %arg21: memref<1x128xf32, #tpu.memory_space<vmem>>, %arg22: memref<16x128xf32, #tpu.memory_space<vmem>>) attributes {dimension_semantics = [], scalar_prefetch = 0 : i64, scratch_operands = 0 : i64, tpu.core_type = #tpu.core_type<tc>} {
    %0 = tpu.iota {dimensions = array<i32: 1>} : vector<32x16xi32>
    %c0 = arith.constant 0 : index
    %c0_0 = arith.constant 0 : index
    %1 = vector.load %arg2[%c0, %c0_0] : memref<32x1xi32, #tpu.memory_space<vmem>>, vector<32x1xi32>
    %2 = vector.broadcast %1 : vector<32x1xi32> to vector<32x16xi32>
    %3 = arith.cmpi eq, %0, %2 : vector<32x16xi32>
    %4 = arith.extui %3 : vector<32x16xi1> to vector<32x16xi32>
    %5 = arith.sitofp %4 : vector<32x16xi32> to vector<32x16xf32>
    %c0_1 = arith.constant 0 : index
    %c0_2 = arith.constant 0 : index
    %6 = vector.load %arg3[%c0_1, %c0_2] : memref<32x1xi32, #tpu.memory_space<vmem>>, vector<32x1xi32>
    %7 = vector.broadcast %6 : vector<32x1xi32> to vector<32x16xi32>
    %8 = arith.cmpi eq, %0, %7 : vector<32x16xi32>
    %9 = arith.extui %8 : vector<32x16xi1> to vector<32x16xi32>
    %10 = arith.sitofp %9 : vector<32x16xi32> to vector<32x16xf32>
    %c0_3 = arith.constant 0 : index
    %c0_4 = arith.constant 0 : index
    %11 = vector.load %arg0[%c0_3, %c0_4] : memref<16x4xf32, #tpu.memory_space<vmem>>, vector<16x4xf32>
    %c0_5 = arith.constant 0 : index
    %c0_6 = arith.constant 0 : index
    %12 = vector.load %arg4[%c0_5, %c0_6] : memref<4x128xf32, #tpu.memory_space<vmem>>, vector<4x128xf32>
    %c0_7 = arith.constant 0 : index
    %c0_8 = arith.constant 0 : index
    %13 = vector.load %arg5[%c0_7, %c0_8] : memref<1x128xf32, #tpu.memory_space<vmem>>, vector<1x128xf32>
    %c0_9 = arith.constant 0 : index
    %c0_10 = arith.constant 0 : index
    %14 = vector.load %arg6[%c0_9, %c0_10] : memref<1x128xf32, #tpu.memory_space<vmem>>, vector<1x128xf32>
    %cst = arith.constant dense<0.000000e+00> : vector<16x128xf32>
    %15 = tpu.matmul %11, %12, %cst {dimension_numbers = #tpu.dot_dimension_numbers<[1], [0], [0], [1], [0, 0, 1, 1], [], []>} : vector<16x4xf32>, vector<4x128xf32>, vector<16x128xf32> -> vector<16x128xf32>
    %cst_11 = arith.constant dense<0.000000e+00> : vector<128xf32>
    %16 = vector.multi_reduction <add>, %15, %cst_11 [0] : vector<16x128xf32> to vector<128xf32>
    %17 = vector.shape_cast %16 : vector<128xf32> to vector<1x128xf32>
    %cst_12 = arith.constant 1.600000e+01 : f32
    %18 = vector.broadcast %cst_12 : f32 to vector<1x128xf32>
    %19 = arith.divf %17, %18 : vector<1x128xf32>
    %20 = vector.broadcast %19 : vector<1x128xf32> to vector<16x128xf32>
    %21 = arith.subf %15, %20 : vector<16x128xf32>
    %22 = arith.mulf %21, %21 : vector<16x128xf32>
    %cst_13 = arith.constant dense<0.000000e+00> : vector<128xf32>
    %23 = vector.multi_reduction <add>, %22, %cst_13 [0] : vector<16x128xf32> to vector<128xf32>
    %24 = vector.shape_cast %23 : vector<128xf32> to vector<1x128xf32>
    %cst_14 = arith.constant 1.600000e+01 : f32
    %25 = vector.broadcast %cst_14 : f32 to vector<1x128xf32>
    %26 = arith.divf %24, %25 : vector<1x128xf32>
    %cst_15 = arith.constant 9.99999974E-6 : f32
    %27 = vector.broadcast %cst_15 : f32 to vector<1x128xf32>
    %28 = arith.addf %26, %27 : vector<1x128xf32>
    %29 = math.rsqrt %28 : vector<1x128xf32>
    %30 = arith.mulf %13, %29 : vector<1x128xf32>
    %31 = vector.broadcast %30 : vector<1x128xf32> to vector<16x128xf32>
    %32 = arith.mulf %21, %31 : vector<16x128xf32>
    %33 = vector.broadcast %14 : vector<1x128xf32> to vector<16x128xf32>
    %34 = arith.addf %32, %33 : vector<16x128xf32>
    %c0_16 = arith.constant 0 : index
    %c0_17 = arith.constant 0 : index
    %35 = vector.load %arg1[%c0_16, %c0_17] : memref<32x4xf32, #tpu.memory_space<vmem>>, vector<32x4xf32>
    %c0_18 = arith.constant 0 : index
    %c0_19 = arith.constant 0 : index
    %36 = vector.load %arg7[%c0_18, %c0_19] : memref<4x128xf32, #tpu.memory_space<vmem>>, vector<4x128xf32>
    %c0_20 = arith.constant 0 : index
    %c0_21 = arith.constant 0 : index
    %37 = vector.load %arg8[%c0_20, %c0_21] : memref<1x128xf32, #tpu.memory_space<vmem>>, vector<1x128xf32>
    %c0_22 = arith.constant 0 : index
    %c0_23 = arith.constant 0 : index
    %38 = vector.load %arg9[%c0_22, %c0_23] : memref<1x128xf32, #tpu.memory_space<vmem>>, vector<1x128xf32>
    %cst_24 = arith.constant dense<0.000000e+00> : vector<32x128xf32>
    %39 = tpu.matmul %35, %36, %cst_24 {dimension_numbers = #tpu.dot_dimension_numbers<[1], [0], [0], [1], [0, 0, 1, 1], [], []>} : vector<32x4xf32>, vector<4x128xf32>, vector<32x128xf32> -> vector<32x128xf32>
    %cst_25 = arith.constant dense<0.000000e+00> : vector<128xf32>
    %40 = vector.multi_reduction <add>, %39, %cst_25 [0] : vector<32x128xf32> to vector<128xf32>
    %41 = vector.shape_cast %40 : vector<128xf32> to vector<1x128xf32>
    %cst_26 = arith.constant 3.200000e+01 : f32
    %42 = vector.broadcast %cst_26 : f32 to vector<1x128xf32>
    %43 = arith.divf %41, %42 : vector<1x128xf32>
    %44 = vector.broadcast %43 : vector<1x128xf32> to vector<32x128xf32>
    %45 = arith.subf %39, %44 : vector<32x128xf32>
    %46 = arith.mulf %45, %45 : vector<32x128xf32>
    %cst_27 = arith.constant dense<0.000000e+00> : vector<128xf32>
    %47 = vector.multi_reduction <add>, %46, %cst_27 [0] : vector<32x128xf32> to vector<128xf32>
    %48 = vector.shape_cast %47 : vector<128xf32> to vector<1x128xf32>
    %cst_28 = arith.constant 3.200000e+01 : f32
    %49 = vector.broadcast %cst_28 : f32 to vector<1x128xf32>
    %50 = arith.divf %48, %49 : vector<1x128xf32>
    %cst_29 = arith.constant 9.99999974E-6 : f32
    %51 = vector.broadcast %cst_29 : f32 to vector<1x128xf32>
    %52 = arith.addf %50, %51 : vector<1x128xf32>
    %53 = math.rsqrt %52 : vector<1x128xf32>
    %54 = arith.mulf %37, %53 : vector<1x128xf32>
    %55 = vector.broadcast %54 : vector<1x128xf32> to vector<32x128xf32>
    %56 = arith.mulf %45, %55 : vector<32x128xf32>
    %57 = vector.broadcast %38 : vector<1x128xf32> to vector<32x128xf32>
    %58 = arith.addf %56, %57 : vector<32x128xf32>
    %c0_30 = arith.constant 0 : index
    %c0_31 = arith.constant 0 : index
    %59 = vector.load %arg10[%c0_30, %c0_31] : memref<128x128xf32, #tpu.memory_space<vmem>>, vector<128x128xf32>
    %c0_32 = arith.constant 0 : index
    %c0_33 = arith.constant 0 : index
    %60 = vector.load %arg11[%c0_32, %c0_33] : memref<1x128xf32, #tpu.memory_space<vmem>>, vector<1x128xf32>
    %c0_34 = arith.constant 0 : index
    %c0_35 = arith.constant 0 : index
    %61 = vector.load %arg12[%c0_34, %c0_35] : memref<128x128xf32, #tpu.memory_space<vmem>>, vector<128x128xf32>
    %c0_36 = arith.constant 0 : index
    %c0_37 = arith.constant 0 : index
    %62 = vector.load %arg13[%c0_36, %c0_37] : memref<128x128xf32, #tpu.memory_space<vmem>>, vector<128x128xf32>
    %c0_38 = arith.constant 0 : index
    %c0_39 = arith.constant 0 : index
    %63 = vector.load %arg14[%c0_38, %c0_39] : memref<128x128xf32, #tpu.memory_space<vmem>>, vector<128x128xf32>
    %c0_40 = arith.constant 0 : index
    %c0_41 = arith.constant 0 : index
    %64 = vector.load %arg15[%c0_40, %c0_41] : memref<1x128xf32, #tpu.memory_space<vmem>>, vector<1x128xf32>
    %cst_42 = arith.constant dense<0.000000e+00> : vector<16x128xf32>
    %65 = tpu.matmul %34, %59, %cst_42 {dimension_numbers = #tpu.dot_dimension_numbers<[1], [0], [0], [1], [0, 0, 1, 1], [], []>} : vector<16x128xf32>, vector<128x128xf32>, vector<16x128xf32> -> vector<16x128xf32>
    %66 = vector.broadcast %60 : vector<1x128xf32> to vector<16x128xf32>
    %67 = arith.addf %65, %66 : vector<16x128xf32>
    %cst_43 = arith.constant dense<0.000000e+00> : vector<16x128xf32>
    %68 = tpu.matmul %67, %61, %cst_43 {dimension_numbers = #tpu.dot_dimension_numbers<[1], [0], [0], [1], [0, 0, 1, 1], [], []>} : vector<16x128xf32>, vector<128x128xf32>, vector<16x128xf32> -> vector<16x128xf32>
    %cst_44 = arith.constant dense<0.000000e+00> : vector<16x128xf32>
    %69 = tpu.matmul %67, %62, %cst_44 {dimension_numbers = #tpu.dot_dimension_numbers<[1], [0], [0], [1], [0, 0, 1, 1], [], []>} : vector<16x128xf32>, vector<128x128xf32>, vector<16x128xf32> -> vector<16x128xf32>
    %cst_45 = arith.constant dense<0.000000e+00> : vector<32x128xf32>
    %70 = tpu.matmul %58, %63, %cst_45 {dimension_numbers = #tpu.dot_dimension_numbers<[1], [0], [0], [1], [0, 0, 1, 1], [], []>} : vector<32x128xf32>, vector<128x128xf32>, vector<32x128xf32> -> vector<32x128xf32>
    %71 = vector.broadcast %64 : vector<1x128xf32> to vector<32x128xf32>
    %72 = arith.addf %70, %71 : vector<32x128xf32>
    %cst_46 = arith.constant dense<0.000000e+00> : vector<32x128xf32>
    %73 = tpu.matmul %5, %67, %cst_46 {dimension_numbers = #tpu.dot_dimension_numbers<[1], [0], [0], [1], [0, 0, 1, 1], [], []>} : vector<32x16xf32>, vector<16x128xf32>, vector<32x128xf32> -> vector<32x128xf32>
    %cst_47 = arith.constant dense<0.000000e+00> : vector<32x128xf32>
    %74 = tpu.matmul %10, %68, %cst_47 {dimension_numbers = #tpu.dot_dimension_numbers<[1], [0], [0], [1], [0, 0, 1, 1], [], []>} : vector<32x16xf32>, vector<16x128xf32>, vector<32x128xf32> -> vector<32x128xf32>
    %cst_48 = arith.constant dense<0.000000e+00> : vector<32x128xf32>
    %75 = tpu.matmul %5, %69, %cst_48 {dimension_numbers = #tpu.dot_dimension_numbers<[1], [0], [0], [1], [0, 0, 1, 1], [], []>} : vector<32x16xf32>, vector<16x128xf32>, vector<32x128xf32> -> vector<32x128xf32>
    %76 = arith.addf %74, %75 : vector<32x128xf32>
    %77 = arith.addf %76, %72 : vector<32x128xf32>
    %cst_49 = arith.constant 0.000000e+00 : f32
    %78 = vector.broadcast %cst_49 : f32 to vector<32x128xf32>
    %79 = arith.cmpf ogt, %77, %78 : vector<32x128xf32>
    %cst_50 = arith.constant 2.000000e-01 : f32
    %80 = vector.broadcast %cst_50 : f32 to vector<32x128xf32>
    %81 = arith.mulf %80, %77 : vector<32x128xf32>
    %82 = arith.select %79, %77, %81 : vector<32x128xi1>, vector<32x128xf32>
    %83 = vector.shape_cast %82 : vector<32x128xf32> to vector<1x32x128xf32>
    %cst_51 = arith.constant dense<0xFF800000> : vector<1xf32>
    %84 = vector.multi_reduction <maximumf>, %83, %cst_51 [1, 2] : vector<1x32x128xf32> to vector<1xf32>
    %85 = vector.shape_cast %84 : vector<1xf32> to vector<1x1x1xf32>
    %86 = vector.extract %85[0, 0, 0] : f32 from vector<1x1x1xf32>
    %87 = vector.broadcast %86 : f32 to vector<32x128xf32>
    %88 = arith.subf %82, %87 : vector<32x128xf32>
    %89 = math.exp %88 : vector<32x128xf32>
    %90 = arith.mulf %89, %73 : vector<32x128xf32>
    %cst_52 = arith.constant dense<0.000000e+00> : vector<16x128xf32>
    %91 = tpu.matmul %10, %90, %cst_52 {dimension_numbers = #tpu.dot_dimension_numbers<[0], [0], [1], [1], [0, 1, 1, 1], [], []>} : vector<32x16xf32>, vector<32x128xf32>, vector<16x128xf32> -> vector<16x128xf32>
    %cst_53 = arith.constant dense<0.000000e+00> : vector<16x128xf32>
    %92 = tpu.matmul %10, %89, %cst_53 {dimension_numbers = #tpu.dot_dimension_numbers<[0], [0], [1], [1], [0, 1, 1, 1], [], []>} : vector<32x16xf32>, vector<32x128xf32>, vector<16x128xf32> -> vector<16x128xf32>
    %cst_54 = arith.constant 1.000000e-16 : f32
    %93 = vector.broadcast %cst_54 : f32 to vector<16x128xf32>
    %94 = arith.addf %92, %93 : vector<16x128xf32>
    %95 = tpu.reciprocal %94 {approx = true} : vector<16x128xf32> -> vector<16x128xf32>
    %96 = arith.mulf %91, %95 : vector<16x128xf32>
    %97 = arith.addf %34, %96 : vector<16x128xf32>
    %c0_55 = arith.constant 0 : index
    %c0_56 = arith.constant 0 : index
    %98 = vector.load %arg16[%c0_55, %c0_56] : memref<128x128xf32, #tpu.memory_space<vmem>>, vector<128x128xf32>
    %c0_57 = arith.constant 0 : index
    %c0_58 = arith.constant 0 : index
    %99 = vector.load %arg17[%c0_57, %c0_58] : memref<1x128xf32, #tpu.memory_space<vmem>>, vector<1x128xf32>
    %c0_59 = arith.constant 0 : index
    %c0_60 = arith.constant 0 : index
    %100 = vector.load %arg18[%c0_59, %c0_60] : memref<128x128xf32, #tpu.memory_space<vmem>>, vector<128x128xf32>
    %c0_61 = arith.constant 0 : index
    %c0_62 = arith.constant 0 : index
    %101 = vector.load %arg19[%c0_61, %c0_62] : memref<128x128xf32, #tpu.memory_space<vmem>>, vector<128x128xf32>
    %c0_63 = arith.constant 0 : index
    %c0_64 = arith.constant 0 : index
    %102 = vector.load %arg20[%c0_63, %c0_64] : memref<128x128xf32, #tpu.memory_space<vmem>>, vector<128x128xf32>
    %c0_65 = arith.constant 0 : index
    %c0_66 = arith.constant 0 : index
    %103 = vector.load %arg21[%c0_65, %c0_66] : memref<1x128xf32, #tpu.memory_space<vmem>>, vector<1x128xf32>
    %cst_67 = arith.constant dense<0.000000e+00> : vector<16x128xf32>
    %104 = tpu.matmul %97, %98, %cst_67 {dimension_numbers = #tpu.dot_dimension_numbers<[1], [0], [0], [1], [0, 0, 1, 1], [], []>} : vector<16x128xf32>, vector<128x128xf32>, vector<16x128xf32> -> vector<16x128xf32>
    %105 = vector.broadcast %99 : vector<1x128xf32> to vector<16x128xf32>
    %106 = arith.addf %104, %105 : vector<16x128xf32>
    %cst_68 = arith.constant dense<0.000000e+00> : vector<16x128xf32>
    %107 = tpu.matmul %106, %100, %cst_68 {dimension_numbers = #tpu.dot_dimension_numbers<[1], [0], [0], [1], [0, 0, 1, 1], [], []>} : vector<16x128xf32>, vector<128x128xf32>, vector<16x128xf32> -> vector<16x128xf32>
    %cst_69 = arith.constant dense<0.000000e+00> : vector<16x128xf32>
    %108 = tpu.matmul %106, %101, %cst_69 {dimension_numbers = #tpu.dot_dimension_numbers<[1], [0], [0], [1], [0, 0, 1, 1], [], []>} : vector<16x128xf32>, vector<128x128xf32>, vector<16x128xf32> -> vector<16x128xf32>
    %cst_70 = arith.constant dense<0.000000e+00> : vector<32x128xf32>
    %109 = tpu.matmul %58, %102, %cst_70 {dimension_numbers = #tpu.dot_dimension_numbers<[1], [0], [0], [1], [0, 0, 1, 1], [], []>} : vector<32x128xf32>, vector<128x128xf32>, vector<32x128xf32> -> vector<32x128xf32>
    %110 = vector.broadcast %103 : vector<1x128xf32> to vector<32x128xf32>
    %111 = arith.addf %109, %110 : vector<32x128xf32>
    %cst_71 = arith.constant dense<0.000000e+00> : vector<32x128xf32>
    %112 = tpu.matmul %5, %106, %cst_71 {dimension_numbers = #tpu.dot_dimension_numbers<[1], [0], [0], [1], [0, 0, 1, 1], [], []>} : vector<32x16xf32>, vector<16x128xf32>, vector<32x128xf32> -> vector<32x128xf32>
    %cst_72 = arith.constant dense<0.000000e+00> : vector<32x128xf32>
    %113 = tpu.matmul %10, %107, %cst_72 {dimension_numbers = #tpu.dot_dimension_numbers<[1], [0], [0], [1], [0, 0, 1, 1], [], []>} : vector<32x16xf32>, vector<16x128xf32>, vector<32x128xf32> -> vector<32x128xf32>
    %cst_73 = arith.constant dense<0.000000e+00> : vector<32x128xf32>
    %114 = tpu.matmul %5, %108, %cst_73 {dimension_numbers = #tpu.dot_dimension_numbers<[1], [0], [0], [1], [0, 0, 1, 1], [], []>} : vector<32x16xf32>, vector<16x128xf32>, vector<32x128xf32> -> vector<32x128xf32>
    %115 = arith.addf %113, %114 : vector<32x128xf32>
    %116 = arith.addf %115, %111 : vector<32x128xf32>
    %cst_74 = arith.constant 0.000000e+00 : f32
    %117 = vector.broadcast %cst_74 : f32 to vector<32x128xf32>
    %118 = arith.cmpf ogt, %116, %117 : vector<32x128xf32>
    %cst_75 = arith.constant 2.000000e-01 : f32
    %119 = vector.broadcast %cst_75 : f32 to vector<32x128xf32>
    %120 = arith.mulf %119, %116 : vector<32x128xf32>
    %121 = arith.select %118, %116, %120 : vector<32x128xi1>, vector<32x128xf32>
    %122 = vector.shape_cast %121 : vector<32x128xf32> to vector<1x32x128xf32>
    %cst_76 = arith.constant dense<0xFF800000> : vector<1xf32>
    %123 = vector.multi_reduction <maximumf>, %122, %cst_76 [1, 2] : vector<1x32x128xf32> to vector<1xf32>
    %124 = vector.shape_cast %123 : vector<1xf32> to vector<1x1x1xf32>
    %125 = vector.extract %124[0, 0, 0] : f32 from vector<1x1x1xf32>
    %126 = vector.broadcast %125 : f32 to vector<32x128xf32>
    %127 = arith.subf %121, %126 : vector<32x128xf32>
    %128 = math.exp %127 : vector<32x128xf32>
    %129 = arith.mulf %128, %112 : vector<32x128xf32>
    %cst_77 = arith.constant dense<0.000000e+00> : vector<16x128xf32>
    %130 = tpu.matmul %10, %129, %cst_77 {dimension_numbers = #tpu.dot_dimension_numbers<[0], [0], [1], [1], [0, 1, 1, 1], [], []>} : vector<32x16xf32>, vector<32x128xf32>, vector<16x128xf32> -> vector<16x128xf32>
    %cst_78 = arith.constant dense<0.000000e+00> : vector<16x128xf32>
    %131 = tpu.matmul %10, %128, %cst_78 {dimension_numbers = #tpu.dot_dimension_numbers<[0], [0], [1], [1], [0, 1, 1, 1], [], []>} : vector<32x16xf32>, vector<32x128xf32>, vector<16x128xf32> -> vector<16x128xf32>
    %cst_79 = arith.constant 1.000000e-16 : f32
    %132 = vector.broadcast %cst_79 : f32 to vector<16x128xf32>
    %133 = arith.addf %131, %132 : vector<16x128xf32>
    %134 = tpu.reciprocal %133 {approx = true} : vector<16x128xf32> -> vector<16x128xf32>
    %135 = arith.mulf %130, %134 : vector<16x128xf32>
    %136 = arith.addf %97, %135 : vector<16x128xf32>
    %c0_80 = arith.constant 0 : index
    %c0_81 = arith.constant 0 : index
    %137 = vector.load %arg22[%c0_80, %c0_81] : memref<16x128xf32, #tpu.memory_space<vmem>>, vector<16x128xf32>
    tpu.vector_store %arg22[%c0_80, %c0_81], %136 {strides = array<i32>} : memref<16x128xf32, #tpu.memory_space<vmem>>, vector<16x128xf32>,
    return
  }
}

</mosaic_0001>

<bundles_post_ra>
// kernel: tpu_custom_call.1
= control target key start
LH: loop header
LB: loop body
LE: loop exit
PB: predicated region body
PF: predicated region fallthrough
CT: control target
= control target key end

     0   :  { %s3681_s0 = inlined_call_operand.vmem [shape: f32[16,4], index: 0, kind: input, shape index: {}]   ;;  %s3682_s1 = inlined_call_operand.vmem [shape: f32[32,4], index: 1, kind: input, shape index: {}]   ;;  %s3683_s2 = inlined_call_operand.vmem [shape: s32[32,1], index: 2, kind: input, shape index: {}]   ;;  %s3684_s3 = inlined_call_operand.vmem [shape: s32[32,1], index: 3, kind: input, shape index: {}]   ;;  %s3685_s4 = inlined_call_operand.vmem [shape: f32[4,128], index: 4, kind: input, shape index: {}]   ;;  %s3686_s5 = inlined_call_operand.vmem [shape: f32[1,128], index: 5, kind: input, shape index: {}]   ;;  %s3687_s6 = inlined_call_operand.vmem [shape: f32[1,128], index: 6, kind: input, shape index: {}]   ;;  %s3688_s7 = inlined_call_operand.vmem [shape: f32[4,128], index: 7, kind: input, shape index: {}]   ;;  %s3689_s8 = inlined_call_operand.vmem [shape: f32[1,128], index: 8, kind: input, shape index: {}]   ;;  %s3690_s9 = inlined_call_operand.vmem [shape: f32[1,128], index: 9, kind: input, shape index: {}]   ;;  %s3691_s10 = inlined_call_operand.vmem [shape: f32[128,128], index: 10, kind: input, shape index: {}]   ;;  %s3692_s11 = inlined_call_operand.vmem [shape: f32[1,128], index: 11, kind: input, shape index: {}]   ;;  %s3693_s12 = inlined_call_operand.hbm [shape: f32[128,128], index: 12, kind: input, shape index: {}]   ;;  %s3694_s13 = inlined_call_operand.hbm [shape: f32[128,128], index: 13, kind: input, shape index: {}]   ;;  %s3695_s14 = inlined_call_operand.hbm [shape: f32[128,128], index: 14, kind: input, shape index: {}]   ;;  %s3696_s15 = inlined_call_operand.vmem [shape: f32[1,128], index: 15, kind: input, shape index: {}]   ;;  %s3697_s16 = inlined_call_operand.hbm [shape: f32[128,128], index: 16, kind: input, shape index: {}]   ;;  %s3698_s17 = inlined_call_operand.vmem [shape: f32[1,128], index: 17, kind: input, shape index: {}]   ;;  %s3699_s18 = inlined_call_operand.hbm [shape: f32[128,128], index: 18, kind: input, shape index: {}]   ;;  %s3700_s19 = inlined_call_operand.hbm [shape: f32[128,128], index: 19, kind: input, shape index: {}]   ;;  %s3701_s20 = inlined_call_operand.hbm [shape: f32[128,128], index: 20, kind: input, shape index: {}]   ;;  %s3702_s21 = inlined_call_operand.vmem [shape: f32[1,128], index: 21, kind: input, shape index: {}]   ;;  %s3703_s22 = inlined_call_operand.hbm [shape: f32[16,128], index: 22, kind: output, shape index: {}]  }
   0x1   :  { %3708 = sst [smem:[#allocation20_spill]] %s3681_s0 }
   0x2   :  { %3709 = sst [smem:[#allocation21_spill]] %s3682_s1 }
   0x3   :  { %3710 = sst [smem:[#allocation22_spill]] %s3683_s2 }
   0x4   :  { %3711 = sst [smem:[#allocation23_spill]] %s3684_s3 }
   0x5   :  { %3712 = sst [smem:[#allocation24_spill]] %s3685_s4 }
   0x6   :  { %3713 = sst [smem:[#allocation25_spill]] %s3686_s5 }
   0x7   :  { %3714 = sst [smem:[#allocation26_spill]] %s3687_s6 }
   0x8   :  { %27 = vsyncpa [#allocation3], 0 }
   0x9   :  { %28 = vsyncpa [#allocation6], 0 }
   0xa   :  { %29 = vsyncpa [#allocation9], 0 }
   0xb   :  { %30 = vsyncpa [#allocation12], 0 }
   0xc   :  { %31 = vsyncpa [#allocation4], 0  ;;  %s3178_s3 = smov [#allocation5]   ;;  %s3179_s29 = smov [#allocation8]  }
   0xd   :  { %s73_s28 = sshll.u32 %s3178_s3, 4  ;;  %s99_s30 = sshll.u32 %s3179_s29, 4  ;;  %s74_s28 = int_to_ptr.vmem [resolvable:$true] %s73_s28  ;;  %s100_s30 = int_to_ptr.vmem [resolvable:$true] %s99_s30 }
   0xe   :  { %s3016_s4 = scalar_lea.vmem %s74_s28, 2048  ;;  %p3021_p1 = scmp.lt.s32.totalorder %s74_s28, %s74_s28 }
   0xf   :  { %p3017_p0 = scmp.ne.s32.totalorder %s74_s28, %s3016_s4  ;;  %p3022_p2 = scmp.lt.s32.totalorder %s3016_s4, %s3016_s4 }
  0x11   :  { %p3023_p3 = por %p3022_p2, %p3021_p1 }
  0x13   :  { %p3024_p4 = pnand %p3023_p3, %p3017_p0 }
  0x15   :  { %3027 = shalt.err (!%p3024_p4)
}
  0x16   :  { %s3180_s0 = smov 128   ;;  %s3181_s23 = smov 8  }
  0x17   :  { %79 = dma.hbm_to_vmem [thread:$0]  %s3694_s13, 2048, %s74_s28, [#allocation6], %s3180_s0, %s3180_s0, %s3181_s23  }
  0x18   :  { %s3036_s24 = scalar_lea.vmem %s100_s30, 2048  ;;  %p3041_p6 = scmp.lt.s32.totalorder %s100_s30, %s100_s30 }
  0x19   :  { %p3037_p5 = scmp.ne.s32.totalorder %s100_s30, %s3036_s24  ;;  %p3042_p7 = scmp.lt.s32.totalorder %s3036_s24, %s3036_s24 }
  0x1b   :  { %p3043_p8 = por %p3042_p7, %p3041_p6 }
  0x1d   :  { %p3044_p9 = pnand %p3043_p8, %p3037_p5 }
  0x1f   :  { %3047 = shalt.err (!%p3044_p9)
}
  0x20   :  { %105 = dma.hbm_to_vmem [thread:$0]  %s3697_s16, 2048, %s100_s30, [#allocation9], %s3180_s0, %s3180_s0, %s3181_s23  }
  0x21   :  { %s3182_s26 = smov [#allocation11]   ;;  %s3183_s27 = smov [#allocation2]  }
  0x22   :  { %s125_s2 = sshll.u32 %s3182_s26, 4  ;;  %s61_s3 = sshll.u32 %s3183_s27, 4  ;;  %s126_s2 = int_to_ptr.vmem [resolvable:$true] %s125_s2  ;;  %s62_s3 = int_to_ptr.vmem [resolvable:$true] %s61_s3 }
  0x23   :  { %s3056_s13 = scalar_lea.vmem %s126_s2, 2048  ;;  %p3061_p11 = scmp.lt.s32.totalorder %s126_s2, %s126_s2 }
  0x24   :  { %p3057_p10 = scmp.ne.s32.totalorder %s126_s2, %s3056_s13  ;;  %p3062_p12 = scmp.lt.s32.totalorder %s3056_s13, %s3056_s13 }
  0x26   :  { %p3063_p13 = por %p3062_p12, %p3061_p11 }
  0x28   :  { %p3064_p0 = pnand %p3063_p13, %p3057_p10 }
  0x2a   :  { %3067 = shalt.err (!%p3064_p0)
}
  0x2b   :  { %131 = dma.hbm_to_vmem [thread:$0]  %s3700_s19, 2048, %s126_s2, [#allocation12], %s3180_s0, %s3180_s0, %s3181_s23  }
  0x2c   :  { %s3076_s16 = scalar_lea.vmem %s62_s3, 2048  ;;  %p3081_p2 = scmp.lt.s32.totalorder %s62_s3, %s62_s3 }
  0x2d   :  { %p3077_p1 = scmp.ne.s32.totalorder %s62_s3, %s3076_s16  ;;  %p3082_p3 = scmp.lt.s32.totalorder %s3076_s16, %s3076_s16 }
  0x2f   :  { %p3083_p4 = por %p3082_p3, %p3081_p2 }
  0x31   :  { %p3084_p5 = pnand %p3083_p4, %p3077_p1 }
  0x33   :  { %3087 = shalt.err (!%p3084_p5)
}
  0x34   :  { %67 = dma.hbm_to_vmem [thread:$0]  %s3693_s12, 2048, %s62_s3, [#allocation3], %s3180_s0, %s3180_s0, %s3181_s23  }
  0x35   :  { %s3184_s1 = smov [#allocation7]   ;;  %s3185_s24 = smov [#allocation10]  }
  0x36   :  { %s85_s5 = sshll.u32 %s3184_s1, 4  ;;  %s113_s6 = sshll.u32 %s3185_s24, 4  ;;  %s86_s5 = int_to_ptr.vmem [resolvable:$true] %s85_s5  ;;  %s114_s6 = int_to_ptr.vmem [resolvable:$true] %s113_s6 }
  0x37   :  { %s3096_s19 = scalar_lea.vmem %s86_s5, 2048  ;;  %p3101_p7 = scmp.lt.s32.totalorder %s86_s5, %s86_s5 }
  0x38   :  { %p3097_p6 = scmp.ne.s32.totalorder %s86_s5, %s3096_s19  ;;  %p3102_p8 = scmp.lt.s32.totalorder %s3096_s19, %s3096_s19 }
  0x3a   :  { %p3103_p9 = por %p3102_p8, %p3101_p7 }
  0x3c   :  { %p3104_p10 = pnand %p3103_p9, %p3097_p6 }
  0x3e   :  { %3107 = shalt.err (!%p3104_p10)
}
  0x3f   :  { %91 = dma.hbm_to_vmem [thread:$0]  %s3695_s14, 2048, %s86_s5, [#allocation6], %s3180_s0, %s3180_s0, %s3181_s23  }
  0x40   :  { %s3116_s12 = scalar_lea.vmem %s114_s6, 2048  ;;  %p3121_p12 = scmp.lt.s32.totalorder %s114_s6, %s114_s6 }
  0x41   :  { %p3117_p11 = scmp.ne.s32.totalorder %s114_s6, %s3116_s12  ;;  %p3122_p13 = scmp.lt.s32.totalorder %s3116_s12, %s3116_s12 }
  0x43   :  { %p3123_p0 = por %p3122_p13, %p3121_p12 }
  0x45   :  { %p3124_p1 = pnand %p3123_p0, %p3117_p11 }
  0x47   :  { %3127 = shalt.err (!%p3124_p1)
}
  0x48   :  { %119 = dma.hbm_to_vmem [thread:$0]  %s3699_s18, 2048, %s114_s6, [#allocation9], %s3180_s0, %s3180_s0, %s3181_s23  }
  0x49   :  { %s3186_s3 = smov [#allocation13]  }
  0x4a   :  { %s137_s13 = sshll.u32 %s3186_s3, 4  ;;  %s138_s13 = int_to_ptr.vmem [resolvable:$true] %s137_s13 }
  0x4b   :  { %s3136_s28 = scalar_lea.vmem %s138_s13, 2048  ;;  %p3141_p3 = scmp.lt.s32.totalorder %s138_s13, %s138_s13 }
  0x4c   :  { %p3137_p2 = scmp.ne.s32.totalorder %s138_s13, %s3136_s28  ;;  %p3142_p4 = scmp.lt.s32.totalorder %s3136_s28, %s3136_s28 }
  0x4e   :  { %p3143_p5 = por %p3142_p4, %p3141_p3 }
  0x50   :  { %p3144_p6 = pnand %p3143_p5, %p3137_p2 }
  0x52   :  { %3147 = shalt.err (!%p3144_p6)
}
  0x53   :  { %143 = dma.hbm_to_vmem [thread:$0]  %s3701_s20, 2048, %s138_s13, [#allocation12], %s3180_s0, %s3180_s0, %s3181_s23  }
  0x54   :  { %3168 = dma.done.wait [#allocation3], 2048  }
  0x55   :  { %3169 = vsyncadd [#allocation3], 4294965248 }
  0x56   :  { %3170 = dma.done.wait [#allocation6], 4096  }
  0x57   :  { %3171 = vsyncadd [#allocation6], 4294963200 }
  0x58   :  { %3172 = dma.done.wait [#allocation9], 4096  }
  0x59   :  { %3173 = vsyncadd [#allocation9], 4294963200 }
  0x5a   :  { %3174 = dma.done.wait [#allocation12], 4096  }
  0x5b   :  { %3175 = vsyncadd [#allocation12], 4294963200  ;;  %vm237_vm0 = vcmask 1043456   ;;  %vm230_vm1 = vcmask 31744   ;;  %s3715_s30 = sld [smem:[#allocation24_spill]]  ;;  %v530_v3 = vld [vmem:[%s3691_s10 + $0x78] sm:$0xff]  ;;  %v167_v61 = vlaneseq }
  0x5c   :  { %s3716_s5 = sld [smem:[#allocation20_spill]]  ;;  %v529_v4 = vld [vmem:[%s3691_s10 + $0x70] sm:$0xff]  ;;  %v528_v5 = vld [vmem:[%s3691_s10 + $0x68] sm:$0xff]  ;;  %v527_v6 = vld [vmem:[%s3691_s10 + $0x60] sm:$0xff]  ;;  %vm903_vm4 = vcmask 130048   ;;  %vm1260_vm15 = vcmask 261120  }
  0x5d   :  { %v526_v7 = vld [vmem:[%s3691_s10 + $0x58] sm:$0xff]  ;;  %v525_v8 = vld [vmem:[%s3691_s10 + $0x50] sm:$0xff]  ;;  %v524_v9 = vld [vmem:[%s3691_s10 + $0x48] sm:$0xff]  ;;  %s3717_s1 = sld [smem:[#allocation21_spill]]  ;;  %v3433_v62 = vshrl.u32 %v167_v61, 7  ;;  %s3189_s29 = smov [#allocation14]  }
  0x5e   :  { %v523_v10 = vld [vmem:[%s3691_s10 + $0x40] sm:$0xff]  ;;  %v522_v11 = vld [vmem:[%s3691_s10 + $0x38] sm:$0xff]  ;;  %v521_v12 = vld [vmem:[%s3691_s10 + $0x30] sm:$0xff]  ;;  %s3718_s26 = sld [smem:[#allocation25_spill]]  ;;  %s2274_s18 = sshll.u32 %s3189_s29, 4  ;;  %s2275_s18 = int_to_ptr.vmem [resolvable:$true] %s2274_s18 }
  0x5f   :  { %v520_v13 = vld [vmem:[%s3691_s10 + $0x28] sm:$0xff]  ;;  %v519_v14 = vld [vmem:[%s3691_s10 + $0x20] sm:$0xff]  ;;  %v518_v15 = vld [vmem:[%s3691_s10 + $0x18] sm:$0xff]  ;;  %s3719_s27 = sld [smem:[#allocation26_spill]]  ;;  %s3148_s16 = scalar_lea.vmem %s2275_s18, 256 }
  0x60   :  { %v517_v16 = vld [vmem:[%s3691_s10 + $0x10] sm:$0xff]  ;;  %v516_v17 = vld [vmem:[%s3691_s10 + $0x8] sm:$0xff]  ;;  %v515_v18 = vld [vmem:[%s3691_s10] sm:$0xff]  ;;  %s3720_s28 = sld [smem:[#allocation22_spill]]  ;;  %p3149_p7 = scmp.ne.s32.totalorder %s2275_s18, %s3148_s16 }
  0x61   :  { %v227_v0 = vld [vmem:[%s3715_s30] sm:$0xf]  ;;  %v3422_v23 = vld [vmem:[#allocation5 + $0x78] sm:$0xff]  ;;  %v546_v26 = vld [vmem:[#allocation2 + $0x70] sm:$0xff]  ;;  %s3721_s24 = sld [smem:[#allocation23_spill]]  ;;  %p3153_p8 = scmp.lt.s32.totalorder %s2275_s18, %s2275_s18 }
  0x62   :  { %v225_v1 = vld [vmem:[%s3716_s5] sm:$0xff]  ;;  %v226_v2 = vld [vmem:[%s3716_s5 + $0x8] sm:$0xff]  ;;  %2559 = vmatprep.subr.msk.mxu0 %vm237_vm0, %v227_v0  ;;  %v547_v24 = vld [vmem:[#allocation2 + $0x78] sm:$0xff]  ;;  %p3154_p9 = scmp.lt.s32.totalorder %s3148_s16, %s3148_s16 }
  0x63   :  { %2561 = vmatprep.mubr.msk.f32.mxu0 %vm230_vm1, %v225_v1  ;;  %2560 = vmatpush3.msk.msra.mxu0 %vm237_vm0, %v227_v0  ;;  %v360_v19 = vld [vmem:[%s3688_s7] sm:$0xf]  ;;  %v357_v21 = vld [vmem:[%s3717_s1 + $0x8] sm:$0xff]  ;;  %v358_v22 = vld [vmem:[%s3717_s1 + $0x10] sm:$0xff]  ;;  %v343_v0 = vsub.s32 0, %v3433_v62 }
  0x64   :  { %2562 = vmatmul.mubr.msk.f32.vlgmr.msra.gmra.mxu0 %vm230_vm1, %v226_v2  ;;  %2572 = vmatprep.subr.mxu0 %v530_v3  ;;  %v356_v20 = vld [vmem:[%s3717_s1] sm:$0xff]  ;;  %v359_v25 = vld [vmem:[%s3717_s1 + $0x18] sm:$0xff]  ;;  %v545_v27 = vld [vmem:[#allocation2 + $0x68] sm:$0xff]  ;;  %p3155_p10 = por %p3154_p9, %p3153_p8 }
  0x65   :  { %2573 = vmatpush3.msra.mxu0 %v530_v3  ;;  %2564 = vmatprep.subr.msk.mxu1 %vm237_vm0, %v360_v19  ;;  %v544_v28 = vld [vmem:[#allocation2 + $0x60] sm:$0xff]  ;;  %v543_v29 = vld [vmem:[#allocation2 + $0x58] sm:$0xff]  ;;  %v542_v30 = vld [vmem:[#allocation2 + $0x50] sm:$0xff] }
  0x66   :  { %2574 = vmatprep.subr.mxu0 %v529_v4  ;;  %2566 = vmatprep.mubr.msk.f32.mxu1 %vm230_vm1, %v356_v20  ;;  %v541_v31 = vld [vmem:[#allocation2 + $0x48] sm:$0xff]  ;;  %v540_v32 = vld [vmem:[#allocation2 + $0x40] sm:$0xff]  ;;  %v539_v33 = vld [vmem:[#allocation2 + $0x38] sm:$0xff]  ;;  %p3156_p11 = pnand %p3155_p10, %p3149_p7 }
  0x67   :  { %2575 = vmatpush3.msra.mxu0 %v529_v4  ;;  %2565 = vmatpush3.msk.msra.mxu1 %vm237_vm0, %v360_v19  ;;  %v538_v34 = vld [vmem:[#allocation2 + $0x30] sm:$0xff]  ;;  %v537_v35 = vld [vmem:[#allocation2 + $0x28] sm:$0xff]  ;;  %v536_v36 = vld [vmem:[#allocation2 + $0x20] sm:$0xff] }
  0x68   :  { %2576 = vmatprep.subr.mxu0 %v528_v5  ;;  %2567 = vmatmul.mubr.msk.f32.vlgmr.msra.gmra.mxu1 %vm230_vm1, %v357_v21  ;;  %v535_v37 = vld [vmem:[#allocation2 + $0x18] sm:$0xff]  ;;  %v228_v63 = vld [vmem:[%s3718_s26] sm:$0x1]  ;;  %v550_v21 = vld [vmem:[#allocation5 + $0x10] sm:$0xff] }
  0x69   :  { %2577 = vmatpush3.msra.mxu0 %v528_v5  ;;  %2607 = vmatprep.subr.mxu1 %v547_v24  ;;  %v2300_v4 = vld [vmem:[%s3719_s27] ss:$0 sm:$0xff]  ;;  %v551_v20 = vld [vmem:[#allocation5 + $0x18] sm:$0xff]  ;;  %v578_v62 = vld [vmem:[#allocation7 + $0x70] sm:$0xff] }
  0x6a   :  { %2578 = vmatprep.subr.mxu0 %v527_v6  ;;  %2569 = vmatprep.mubr.msk.f32.mxu1 %vm230_vm1, %v358_v22  ;;  %v552_v19 = vld [vmem:[#allocation5 + $0x20] sm:$0xff]  ;;  %v549_v22 = vld [vmem:[#allocation5 + $0x8] sm:$0xff] }
  0x6b   :  { %2579 = vmatpush3.msra.mxu0 %v527_v6  ;;  %2608 = vmatpush3.msra.mxu1 %v547_v24  ;;  %v548_v24 = vld [vmem:[#allocation5] sm:$0xff] }
  0x6c   :  { %2580 = vmatprep.subr.mxu0 %v526_v7  ;;  %2609 = vmatprep.subr.mxu1 %v546_v26 }
  0x6d   :  { %2581 = vmatpush3.msra.mxu0 %v526_v7  ;;  %2610 = vmatpush3.msra.mxu1 %v546_v26  ;;  %v532_v26 = vld [vmem:[#allocation2] sm:$0xff] }
  0x6e   :  { %2582 = vmatprep.subr.mxu0 %v525_v8  ;;  %2570 = vmatmul.mubr.msk.f32.gmra.mxu1 %vm230_vm1, %v359_v25  ;;  %v533_v25 = vld [vmem:[#allocation2 + $0x8] sm:$0xff] }
  0x6f   :  { %2583 = vmatpush3.msra.mxu0 %v525_v8  ;;  %2611 = vmatprep.subr.mxu1 %v545_v27 }
  0x70   :  { %2584 = vmatprep.subr.mxu0 %v524_v9  ;;  %2612 = vmatpush3.msra.mxu1 %v545_v27  ;;  %v169_v27 = vld [vmem:[%s3720_s28] sm:$0xff] }
  0x71   :  { %2585 = vmatpush3.msra.mxu0 %v524_v9  ;;  %2613 = vmatprep.subr.mxu1 %v544_v28  ;;  %v562_v9 = vld [vmem:[#allocation5 + $0x70] sm:$0xff] }
  0x72   :  { %2586 = vmatprep.subr.mxu0 %v523_v10  ;;  %2614 = vmatpush3.msra.mxu1 %v544_v28 }
  0x73   :  { %2587 = vmatpush3.msra.mxu0 %v523_v10  ;;  %2615 = vmatprep.subr.mxu1 %v543_v29  ;;  %v561_v10 = vld [vmem:[#allocation5 + $0x68] sm:$0xff] }
  0x74   :  { %2588 = vmatprep.subr.mxu0 %v522_v11  ;;  %2616 = vmatpush3.msra.mxu1 %v543_v29  ;;  %v171_v29 = vld [vmem:[%s3720_s28 + $0x10] sm:$0xff] }
  0x75   :  { %2589 = vmatpush3.msra.mxu0 %v522_v11  ;;  %2617 = vmatprep.subr.mxu1 %v542_v30  ;;  %v560_v11 = vld [vmem:[#allocation5 + $0x60] sm:$0xff] }
  0x76   :  { %2590 = vmatprep.subr.mxu0 %v521_v12  ;;  %2618 = vmatpush3.msra.mxu1 %v542_v30  ;;  %v3187_v30 = vmov 0  }
  0x77   :  { %2591 = vmatpush3.msra.mxu0 %v521_v12  ;;  %2619 = vmatprep.subr.mxu1 %v541_v31  ;;  %v559_v12 = vld [vmem:[#allocation5 + $0x58] sm:$0xff] }
  0x78   :  { %2592 = vmatprep.subr.mxu0 %v520_v13  ;;  %2620 = vmatpush3.msra.mxu1 %v541_v31 }
  0x79   :  { %2593 = vmatpush3.msra.mxu0 %v520_v13  ;;  %2621 = vmatprep.subr.mxu1 %v540_v32  ;;  %v558_v13 = vld [vmem:[#allocation5 + $0x50] sm:$0xff] }
  0x7a   :  { %2594 = vmatprep.subr.mxu0 %v519_v14  ;;  %2622 = vmatpush3.msra.mxu1 %v540_v32  ;;  %v170_v32 = vld [vmem:[%s3720_s28 + $0x8] sm:$0xff] }
  0x7b   :  { %2595 = vmatpush3.msra.mxu0 %v519_v14  ;;  %2623 = vmatprep.subr.mxu1 %v539_v33  ;;  %v557_v14 = vld [vmem:[#allocation5 + $0x48] sm:$0xff] }
  0x7c   :  { %2596 = vmatprep.subr.mxu0 %v518_v15  ;;  %2624 = vmatpush3.msra.mxu1 %v539_v33  ;;  %v172_v33 = vld [vmem:[%s3720_s28 + $0x18] sm:$0xff] }
  0x7d   :  { %2597 = vmatpush3.msra.mxu0 %v518_v15  ;;  %2625 = vmatprep.subr.mxu1 %v538_v34  ;;  %v556_v15 = vld [vmem:[#allocation5 + $0x40] sm:$0xff] }
  0x7e   :  { %2598 = vmatprep.subr.mxu0 %v517_v16  ;;  %2626 = vmatpush3.msra.mxu1 %v538_v34  ;;  %v3463_v34 = vld [vmem:[#allocation7 + $0x78] sm:$0xff] }
  0x7f   :  { %2599 = vmatpush3.msra.mxu0 %v517_v16  ;;  %2627 = vmatprep.subr.mxu1 %v537_v35  ;;  %v555_v16 = vld [vmem:[#allocation5 + $0x38] sm:$0xff] }
  0x80   :  { %2600 = vmatprep.subr.mxu0 %v516_v17  ;;  %2628 = vmatpush3.msra.mxu1 %v537_v35 }
  0x81   :  { %2601 = vmatpush3.msra.mxu0 %v516_v17  ;;  %2629 = vmatprep.subr.mxu1 %v536_v36  ;;  %v554_v17 = vld [vmem:[#allocation5 + $0x30] sm:$0xff] }
  0x82   :  { %2602 = vmatprep.subr.mxu0 %v515_v18  ;;  %2630 = vmatpush3.msra.mxu1 %v536_v36 }
  0x83   :  { %2603 = vmatpush3.msra.mxu0 %v515_v18  ;;  %2631 = vmatprep.subr.mxu1 %v535_v37  ;;  %v553_v18 = vld [vmem:[#allocation5 + $0x28] sm:$0xff] }
  0x84   :  { %2642 = vmatprep.subr.mxu0 %v3422_v23  ;;  %2632 = vmatpush3.msra.mxu1 %v535_v37 }
  0x85   :  { %2978 = vset.pattern.permute.xlu0 %v3187_v30  ;;  %2979 = vset.pattern.permute.xlu1 %v3187_v30  ;;  %v575_v30 = vld [vmem:[#allocation7 + $0x58] sm:$0xff] }
  0x86   :  { %174 = vperm.xlu0 %2978, %v169_v27   ;;  %180 = vperm.xlu1 %2979, %v171_v29   ;;  %v576_v27 = vld [vmem:[#allocation7 + $0x60] sm:$0xff] }
  0x8a   :  { %177 = vperm.xlu0 %2978, %v170_v32   ;;  %183 = vperm.xlu1 %2979, %v172_v33   ;;  %v574_v33 = vld [vmem:[#allocation7 + $0x50] sm:$0xff] }
 0x124   :  { %v2563_v38 = vpop.f32.mrf.mxu0 }
 0x126   :  { %v307_v39 = vpop.f32.mrf.mxu0 }
 0x127   :  { %v316_v40 = vadd.f32 %v2563_v38, %v307_v39 }
 0x128   :  { %v2568_v28 = vpop.f32.mrf.mxu1 }
 0x129   :  { %v317_v41 = vrot.slane %v316_v40, 4 }
 0x12a   :  { %v444_v31 = vpop.f32.mrf.mxu1 }
 0x12b   :  { %v318_v42 = vadd.f32 %v317_v41, %v316_v40  ;;  %v463_v36 = vadd.f32 %v2568_v28, %v444_v31  ;;  %v199_v41 = vld [vmem:[%s3721_s24 + $0x10] sm:$0xff] }
 0x12d   :  { %v319_v43 = vrot.slane %v318_v42, 2 }
 0x12e   :  { %v2571_v35 = vpop.f32.mrf.mxu1 }
 0x12f   :  { %v320_v44 = vadd.f32 %v319_v43, %v318_v42  ;;  %v200_v42 = vld [vmem:[%s3721_s24 + $0x18] sm:$0xff] }
 0x130   :  { %v454_v37 = vpop.f32.mrf.mxu1 }
 0x131   :  { %v321_v45 = vrot.slane %v320_v44, 1  ;;  %v464_v40 = vadd.f32 %v463_v36, %v454_v37  ;;  %v573_v36 = vld [vmem:[#allocation7 + $0x48] sm:$0xff] }
 0x133   :  { %v322_v46 = vadd.f32 %v321_v45, %v320_v44  ;;  %v465_v43 = vadd.f32 %v2571_v35, %v464_v40 }
 0x135   :  { %v324_v47 = vmul.f32 0.0625, %v322_v46  ;;  %v466_v44 = vrot.slane %v465_v43, 4 }
 0x137   :  { %v325_v48 = vsub.f32 %v307_v39, %v324_v47  ;;  %v326_v49 = vsub.f32 %v2563_v38, %v324_v47  ;;  %v197_v38 = vld [vmem:[%s3721_s24] sm:$0xff]  ;;  %v198_v39 = vld [vmem:[%s3721_s24 + $0x8] sm:$0xff]  ;;  %v467_v45 = vadd.f32 %v466_v44, %v465_v43  ;;  %v570_v44 = vld [vmem:[#allocation7 + $0x30] sm:$0xff] }
 0x138   :  { %202 = vperm.xlu0 %2978, %v197_v38   ;;  %205 = vperm.xlu1 %2979, %v198_v39   ;;  %v572_v39 = vld [vmem:[#allocation7 + $0x40] sm:$0xff] }
 0x139   :  { %v327_v50 = vmul.f32 %v325_v48, %v325_v48  ;;  %v328_v51 = vmul.f32 %v326_v49, %v326_v49  ;;  %v468_v46 = vrot.slane %v467_v45, 2 }
 0x13b   :  { %v329_v52 = vadd.f32 %v328_v51, %v327_v50  ;;  %v469_v47 = vadd.f32 %v468_v46, %v467_v45  ;;  %v569_v46 = vld [vmem:[#allocation7 + $0x28] sm:$0xff] }
 0x13c   :  { %208 = vperm.xlu0 %2978, %v199_v41   ;;  %211 = vperm.xlu1 %2979, %v200_v42   ;;  %v571_v42 = vld [vmem:[#allocation7 + $0x38] sm:$0xff] }
 0x13d   :  { %v330_v53 = vrot.slane %v329_v52, 4 }
 0x13f   :  { %v331_v54 = vadd.f32 %v330_v53, %v329_v52 }
 0x141   :  { %v332_v55 = vrot.slane %v331_v54, 2 }
 0x143   :  { %v333_v56 = vadd.f32 %v332_v55, %v331_v54 }
 0x145   :  { %v334_v57 = vrot.slane %v333_v56, 1 }
 0x147   :  { %v335_v58 = vadd.f32 %v334_v57, %v333_v56 }
 0x149   :  { %v336_v59 = vmul.f32 0.0625, %v335_v58 }
 0x14b   :  { %v337_v60 = vadd.f32 1e-05, %v336_v59 }
 0x14d   :  { %2980 = vrsqrt.f32 %v337_v60 }
 0x15a   :  { %v2981_v1 = vpop.eup %2980 }
 0x15b   :  { %v339_v2 = vmul.f32 %v2981_v1, %v228_v63 }
 0x15d   :  { %v344_v3 = vrot.slane %v339_v2, %v343_v0 }
 0x15f   :  { %v346_v5 = vmul.f32 %v344_v3, %v325_v48  ;;  %v347_v6 = vmul.f32 %v344_v3, %v326_v49  ;;  %v470_v48 = vrot.slane %v469_v47, 1 }
 0x161   :  { %v3444_v7 = vadd.f32 %v2300_v4, %v346_v5  ;;  %v3446_v8 = vadd.f32 %v2300_v4, %v347_v6  ;;  %v471_v49 = vadd.f32 %v470_v48, %v469_v47  ;;  %v568_v47 = vld [vmem:[#allocation7 + $0x20] sm:$0xff] }
 0x163   :  { %2604 = vmatprep.mubr.f32.mxu0 %v3444_v7  ;;  %v473_v50 = vmul.f32 0.03125, %v471_v49  ;;  %v567_v49 = vld [vmem:[#allocation7 + $0x18] sm:$0xff] }
 0x164   :  { %2605 = vmatmul.mubr.f32.vlgmr.msra.gmra.mxu0 %v3446_v8 }
 0x165   :  { %2643 = vmatpush3.msra.mxu0 %v3422_v23  ;;  %v534_v23 = vld [vmem:[#allocation2 + $0x10] sm:$0xff]  ;;  %v474_v51 = vsub.f32 %v444_v31, %v473_v50  ;;  %v3478_v52 = vsub.f32 %v2568_v28, %v473_v50  ;;  %v3480_v53 = vsub.f32 %v454_v37, %v473_v50  ;;  %v3484_v56 = vsub.f32 %v2571_v35, %v473_v50 }
 0x166   :  { %2644 = vmatprep.subr.mxu0 %v562_v9  ;;  %2633 = vmatprep.subr.mxu1 %v534_v23  ;;  %v566_v50 = vld [vmem:[#allocation7 + $0x10] sm:$0xff] }
 0x167   :  { %2645 = vmatpush3.msra.mxu0 %v562_v9  ;;  %2634 = vmatpush3.msra.mxu1 %v534_v23  ;;  %v478_v54 = vmul.f32 %v474_v51, %v474_v51  ;;  %v479_v55 = vmul.f32 %v3478_v52, %v3478_v52  ;;  %v480_v57 = vmul.f32 %v3480_v53, %v3480_v53  ;;  %v175_v23 = vpop.permute.xlu0 %174 }
 0x168   :  { %2646 = vmatprep.subr.mxu0 %v561_v10  ;;  %2635 = vmatprep.subr.mxu1 %v533_v25  ;;  %v481_v59 = vmul.f32 %v3484_v56, %v3484_v56 }
 0x169   :  { %2647 = vmatpush3.msra.mxu0 %v561_v10  ;;  %2636 = vmatpush3.msra.mxu1 %v533_v25  ;;  %v482_v58 = vadd.f32 %v479_v55, %v478_v54  ;;  %v577_v25 = vld [vmem:[#allocation7 + $0x68] sm:$0xff] }
 0x16a   :  { %2648 = vmatprep.subr.mxu0 %v560_v11  ;;  %2637 = vmatprep.subr.mxu1 %v532_v26  ;;  %v565_v55 = vld [vmem:[#allocation7 + $0x8] sm:$0xff] }
 0x16b   :  { %2649 = vmatpush3.msra.mxu0 %v560_v11  ;;  %2638 = vmatpush3.msra.mxu1 %v532_v26  ;;  %v483_v60 = vadd.f32 %v482_v58, %v480_v57  ;;  %v178_v28 = vpop.permute.xlu0 %177  ;;  %v564_v57 = vld [vmem:[#allocation7] sm:$0xff] }
 0x16c   :  { %2650 = vmatprep.subr.mxu0 %v559_v12  ;;  %2677 = vmatprep.subr.mxu1 %v3463_v34 }
 0x16d   :  { %2651 = vmatpush3.msra.mxu0 %v559_v12  ;;  %v484_v63 = vadd.f32 %v483_v60, %v481_v59  ;;  %v361_v12 = vld [vmem:[%s3689_s8] sm:$0x1] }
 0x16e   :  { %2652 = vmatprep.subr.mxu0 %v558_v13 }
 0x16f   :  { %2653 = vmatpush3.msra.mxu0 %v558_v13  ;;  %v485_v1 = vrot.slane %v484_v63, 4 }
 0x170   :  { %2654 = vmatprep.subr.mxu0 %v557_v14 }
 0x171   :  { %2655 = vmatpush3.msra.mxu0 %v557_v14  ;;  %v486_v2 = vadd.f32 %v485_v1, %v484_v63  ;;  %v2307_v14 = vld [vmem:[%s3692_s11] ss:$0 sm:$0xff] }
 0x172   :  { %2656 = vmatprep.subr.mxu0 %v556_v15 }
 0x173   :  { %2657 = vmatpush3.msra.mxu0 %v556_v15  ;;  %v487_v3 = vrot.slane %v486_v2, 2 }
 0x174   :  { %2658 = vmatprep.subr.mxu0 %v555_v16 }
 0x175   :  { %2659 = vmatpush3.msra.mxu0 %v555_v16  ;;  %v488_v4 = vadd.f32 %v487_v3, %v486_v2 }
 0x176   :  { %2660 = vmatprep.subr.mxu0 %v554_v17 }
 0x177   :  { %2661 = vmatpush3.msra.mxu0 %v554_v17  ;;  %v489_v5 = vrot.slane %v488_v4, 1 }
 0x178   :  { %2662 = vmatprep.subr.mxu0 %v553_v18 }
 0x179   :  { %2663 = vmatpush3.msra.mxu0 %v553_v18  ;;  %v490_v6 = vadd.f32 %v489_v5, %v488_v4 }
 0x17a   :  { %2664 = vmatprep.subr.mxu0 %v552_v19 }
 0x17b   :  { %2665 = vmatpush3.msra.mxu0 %v552_v19  ;;  %v491_v9 = vmul.f32 0.03125, %v490_v6 }
 0x17c   :  { %2666 = vmatprep.subr.mxu0 %v551_v20 }
 0x17d   :  { %2667 = vmatpush3.msra.mxu0 %v551_v20  ;;  %v492_v10 = vadd.f32 1e-05, %v491_v9 }
 0x17e   :  { %2668 = vmatprep.subr.mxu0 %v550_v21 }
 0x17f   :  { %2669 = vmatpush3.msra.mxu0 %v550_v21  ;;  %2982 = vrsqrt.f32 %v492_v10  ;;  %v3504_v21 = vld [vmem:[%s3690_s9] ss:$0 sm:$0xff] }
 0x180   :  { %2670 = vmatprep.subr.mxu0 %v549_v22 }
 0x181   :  { %2671 = vmatpush3.msra.mxu0 %v549_v22  ;;  %v3507_v22 = vand.u32 127, %v167_v61  ;;  %v3188_v61 = vmov 0.0  }
 0x182   :  { %2672 = vmatprep.subr.mxu0 %v548_v24 }
 0x183   :  { %2673 = vmatpush3.msra.mxu0 %v548_v24  ;;  %v181_v24 = vpop.permute.xlu1 %180  ;;  %vm185_vm2 = vcmp.eq.s32.totalorder %v3507_v22, %v175_v23  ;;  %vm186_vm5 = vcmp.eq.s32.totalorder %v3507_v22, %v178_v28 }
 0x184   :  { %v3514_v26 = vsel %vm185_vm2, 1.0, %v3188_v61  ;;  %vm187_vm3 = vcmp.eq.s32.totalorder %v3507_v22, %v181_v24  ;;  %v3523_v32 = vsel %vm186_vm5, 1.0, %v3188_v61 }
 0x185   :  { %v3518_v31 = vsel %vm187_vm3, 1.0, %v3188_v61 }
 0x187   :  { %v184_v29 = vpop.permute.xlu1 %183 }
 0x188   :  { %vm188_vm6 = vcmp.eq.s32.totalorder %v3507_v22, %v184_v29 }
 0x189   :  { %v3530_v37 = vsel %vm188_vm6, 1.0, %v3188_v61 }
 0x18c   :  { %v2983_v11 = vpop.eup %2982 }
 0x18d   :  { %v494_v13 = vmul.f32 %v2983_v11, %v361_v12  ;;  %v2308_v12 = vld [vmem:[%s3696_s15] ss:$0 sm:$0xff] }
 0x18f   :  { %v3498_v15 = vrot.slane %v494_v13, %v343_v0 }
 0x191   :  { %v501_v19 = vmul.f32 %v3498_v15, %v474_v51  ;;  %v502_v51 = vmul.f32 %v3498_v15, %v3478_v52  ;;  %v503_v54 = vmul.f32 %v3498_v15, %v3480_v53  ;;  %v504_v59 = vmul.f32 %v3498_v15, %v3484_v56 }
 0x193   :  { %v3510_v0 = vadd.f32 %v3504_v21, %v501_v19  ;;  %v3557_v58 = vadd.f32 %v3504_v21, %v502_v51  ;;  %v3562_v60 = vadd.f32 %v3504_v21, %v503_v54  ;;  %v3566_v52 = vadd.f32 %v3504_v21, %v504_v59 }
 0x1b3   :  { %v206_v35 = vpop.permute.xlu1 %205 }
 0x1b4   :  { %vm214_vm8 = vcmp.eq.s32.totalorder %v3507_v22, %v206_v35 }
 0x1b5   :  { %v3537_v40 = vsel %vm214_vm8, 1.0, %v3188_v61 }
 0x1b7   :  { %v212_v43 = vpop.permute.xlu1 %211 }
 0x1b8   :  { %vm216_vm10 = vcmp.eq.s32.totalorder %v3507_v22, %v212_v43 }
 0x1b9   :  { %v3549_v48 = vsel %vm216_vm10, 1.0, %v3188_v61 }
 0x224   :  { %v2606_v16 = vpop.f32.mrf.mxu0 }
 0x225   :  { %v659_v17 = vadd.f32 %v2606_v16, %v2307_v14 }
 0x226   :  { %v653_v18 = vpop.f32.mrf.mxu0 }
 0x227   :  { %v654_v20 = vadd.f32 %v2307_v14, %v653_v18  ;;  %2715 = vmatprep.subr.mxu0 %v659_v17 }
 0x229   :  { %2639 = vmatprep.mubr.f32.mxu1 %v654_v20  ;;  %2674 = vmatprep.mubr.f32.mxu0 %v654_v20 }
 0x22a   :  { %2640 = vmatmul.mubr.f32.vlgmr.msra.gmra.mxu1 %v659_v17  ;;  %2675 = vmatmul.mubr.f32.vlgmr.msra.gmra.mxu0 %v659_v17 }
 0x22b   :  { %2716 = vmatpush3.msra.mxu0 %v659_v17  ;;  %2678 = vmatpush3.msra.mxu1 %v3463_v34  ;;  %v203_v34 = vpop.permute.xlu0 %202 }
 0x22c   :  { %2717 = vmatprep.subr.mxu0 %v654_v20  ;;  %2679 = vmatprep.subr.mxu1 %v578_v62  ;;  %vm213_vm7 = vcmp.eq.s32.totalorder %v3507_v22, %v203_v34 }
 0x22d   :  { %2718 = vmatpush3.msra.mxu0 %v654_v20  ;;  %2680 = vmatpush3.msra.mxu1 %v578_v62  ;;  %v3534_v38 = vsel %vm213_vm7, 1.0, %v3188_v61 }
 0x22e   :  { %2681 = vmatprep.subr.mxu1 %v577_v25  ;;  %2709 = vmatprep.mubr.f32.mxu1 %v3510_v0 }
 0x22f   :  { %2682 = vmatpush3.msra.mxu1 %v577_v25  ;;  %2719 = vmatprep.mubr.msk.f32.mxu0 %vm903_vm4, %v3514_v26  ;;  %v209_v41 = vpop.permute.xlu0 %208 }
 0x230   :  { %2683 = vmatprep.subr.mxu1 %v576_v27  ;;  %2720 = vmatmul.mubr.msk.f32.vlgmr.msra.gmra.mxu0 %vm903_vm4, %v3523_v32  ;;  %vm215_vm9 = vcmp.eq.s32.totalorder %v3507_v22, %v209_v41 }
 0x231   :  { %2684 = vmatpush3.msra.mxu1 %v576_v27  ;;  %2722 = vmatprep.mubr.msk.f32.mxu0 %vm903_vm4, %v3518_v31  ;;  %v3545_v45 = vsel %vm215_vm9, 1.0, %v3188_v61 }
 0x232   :  { %2685 = vmatprep.subr.mxu1 %v575_v30  ;;  %1228 = vxpose.xlu1.b32.start [1/4] (short) (narrow) %v3534_v38, 16 }
 0x233   :  { %2686 = vmatpush3.msra.mxu1 %v575_v30 }
 0x234   :  { %2687 = vmatprep.subr.mxu1 %v574_v33  ;;  %2723 = vmatmul.mubr.msk.f32.gmra.mxu0 %vm903_vm4, %v3530_v37 }
 0x235   :  { %2688 = vmatpush3.msra.mxu1 %v574_v33  ;;  %2739 = vmatprep.mubr.msk.f32.mxu0 %vm903_vm4, %v3534_v38 }
 0x236   :  { %2689 = vmatprep.subr.mxu1 %v573_v36  ;;  %1229 = vxpose.xlu1.b32.cont [2/4] (short) (narrow) %v3537_v40, 16 }
 0x237   :  { %2690 = vmatpush3.msra.mxu1 %v573_v36 }
 0x238   :  { %2691 = vmatprep.subr.mxu1 %v572_v39 }
 0x239   :  { %2692 = vmatpush3.msra.mxu1 %v572_v39 }
 0x23a   :  { %2693 = vmatprep.subr.mxu1 %v571_v42  ;;  %1230 = vxpose.xlu1.b32.cont [3/4] (short) (narrow) %v3545_v45, 16 }
 0x23b   :  { %2694 = vmatpush3.msra.mxu1 %v571_v42 }
 0x23c   :  { %2695 = vmatprep.subr.mxu1 %v570_v44 }
 0x23d   :  { %2696 = vmatpush3.msra.mxu1 %v570_v44 }
 0x23e   :  { %2697 = vmatprep.subr.mxu1 %v569_v46  ;;  %1231 = vxpose.xlu1.b32.end [4/4] (short) (narrow) %v3549_v48, 16 }
 0x23f   :  { %2698 = vmatpush3.msra.mxu1 %v569_v46 }
 0x240   :  { %2699 = vmatprep.subr.mxu1 %v568_v47 }
 0x241   :  { %2700 = vmatpush3.msra.mxu1 %v568_v47 }
 0x242   :  { %2701 = vmatprep.subr.mxu1 %v567_v49 }
 0x243   :  { %2702 = vmatpush3.msra.mxu1 %v567_v49 }
 0x244   :  { %2703 = vmatprep.subr.mxu1 %v566_v50 }
 0x245   :  { %2704 = vmatpush3.msra.mxu1 %v566_v50 }
 0x246   :  { %2705 = vmatprep.subr.mxu1 %v565_v55 }
 0x247   :  { %2706 = vmatpush3.msra.mxu1 %v565_v55 }
 0x248   :  { %2707 = vmatprep.subr.mxu1 %v564_v57 }
 0x249   :  { %2708 = vmatpush3.msra.mxu1 %v564_v57 }
 0x24a   :  { %2710 = vmatmul.mubr.f32.vlgmr.msra.gmra.mxu1 %v3557_v58 }
 0x24b   :  { %2712 = vmatprep.mubr.f32.mxu1 %v3562_v60 }
 0x24e   :  { %2713 = vmatmul.mubr.f32.gmra.mxu1 %v3566_v52 }
 0x24f   :  { %2729 = vmatprep.mubr.msk.f32.mxu1 %vm903_vm4, %v3514_v26 }
 0x2ae   :  { %v3595_v50 = vpop.trf.xlu1 }
 0x2ea   :  { %v2641_v53 = vpop.f32.mrf.mxu1  ;;  %v2676_v56 = vpop.f32.mrf.mxu0 }
 0x2eb   :  { %2725 = vmatprep.subr.mxu1 %v2676_v56  ;;  %2735 = vmatprep.subr.mxu0 %v2641_v53 }
 0x2ec   :  { %v728_v63 = vpop.f32.mrf.mxu1  ;;  %v803_v1 = vpop.f32.mrf.mxu0  ;;  %2726 = vmatpush3.msra.mxu1 %v2676_v56  ;;  %2736 = vmatpush3.msra.mxu0 %v2641_v53 }
 0x2ed   :  { %2727 = vmatprep.subr.mxu1 %v803_v1  ;;  %2737 = vmatprep.subr.mxu0 %v728_v63 }
 0x2ee   :  { %2728 = vmatpush3.msra.mxu1 %v803_v1  ;;  %2738 = vmatpush3.msra.mxu0 %v728_v63 }
 0x2ef   :  { %2730 = vmatmul.mubr.msk.f32.vlgmr.msra.gmra.mxu1 %vm903_vm4, %v3523_v32  ;;  %2740 = vmatmul.mubr.msk.f32.vlgmr.msra.gmra.mxu0 %vm903_vm4, %v3537_v40 }
 0x2f0   :  { %2732 = vmatprep.mubr.msk.f32.mxu1 %vm903_vm4, %v3518_v31  ;;  %2742 = vmatprep.mubr.msk.f32.mxu0 %vm903_vm4, %v3545_v45  ;;  %v3584_v3 = vpop.f32.mrf.mxu0 }
 0x2f2   :  { %v3586_v5 = vpop.f32.mrf.mxu0 }
 0x2f3   :  { %2733 = vmatmul.mubr.msk.f32.gmra.mxu1 %vm903_vm4, %v3530_v37  ;;  %2743 = vmatmul.mubr.msk.f32.gmra.mxu0 %vm903_vm4, %v3549_v48 }
 0x2f4   :  { %v3588_v9 = vpop.f32.mrf.mxu0  ;;  %2753 = vmatprep.mubr.msk.f32.mxu1 %vm1260_vm15, %v3595_v50  ;;  %2764 = vmatprep.mubr.msk.f32.mxu0 %vm1260_vm15, %v3595_v50 }
 0x2f6   :  { %v3590_v11 = vpop.f32.mrf.mxu0 }
 0x30a   :  { %v2711_v2 = vpop.f32.mrf.mxu1 }
 0x30b   :  { %v890_v18 = vadd.f32 %v2711_v2, %v2308_v12 }
 0x30c   :  { %v884_v4 = vpop.f32.mrf.mxu1 }
 0x30d   :  { %v885_v19 = vadd.f32 %v2308_v12, %v884_v4 }
 0x30e   :  { %v2714_v6 = vpop.f32.mrf.mxu1 }
 0x30f   :  { %v900_v62 = vadd.f32 %v2714_v6, %v2308_v12 }
 0x310   :  { %v894_v10 = vpop.f32.mrf.mxu1 }
 0x311   :  { %v895_v28 = vadd.f32 %v2308_v12, %v894_v10 }
 0x3af   :  { %v2731_v13 = vpop.f32.mrf.mxu1  ;;  %v2741_v14 = vpop.f32.mrf.mxu0 }
 0x3b0   :  { %v1170_v15 = vadd.f32 %v2741_v14, %v2731_v13 }
 0x3b1   :  { %v1067_v16 = vpop.f32.mrf.mxu1  ;;  %v1164_v17 = vpop.f32.mrf.mxu0 }
 0x3b2   :  { %v1165_v20 = vadd.f32 %v1164_v17, %v1067_v16  ;;  %v1184_v23 = vadd.f32 %v1170_v15, %v890_v18 }
 0x3b3   :  { %v2734_v21 = vpop.f32.mrf.mxu1  ;;  %v2744_v22 = vpop.f32.mrf.mxu0 }
 0x3b4   :  { %v1183_v24 = vadd.f32 %v1165_v20, %v885_v19  ;;  %v1180_v25 = vadd.f32 %v2744_v22, %v2734_v21  ;;  %v1192_v34 = vmul.f32 0.2, %v1184_v23  ;;  %vm1188_vm12 = vcmp.gt.f32.partialorder %v1184_v23, 0.0  ;;  %v3604_v22 = vpop.trf.xlu1 }
 0x3b5   :  { %v1077_v61 = vpop.f32.mrf.mxu1  ;;  %v1174_v27 = vpop.f32.mrf.mxu0 }
 0x3b6   :  { %v1191_v29 = vmul.f32 0.2, %v1183_v24  ;;  %v1186_v30 = vadd.f32 %v1180_v25, %v900_v62  ;;  %v1175_v33 = vadd.f32 %v1174_v27, %v1077_v61  ;;  %vm1187_vm11 = vcmp.gt.f32.partialorder %v1183_v24, 0.0  ;;  %v1438_v62 = vld [vmem:[#allocation8 + $0x78] sm:$0xff]  ;;  %v1432_v25 = vld [vmem:[#allocation8 + $0x48] sm:$0xff]  ;;  %v1431_v61 = vld [vmem:[#allocation8 + $0x40] sm:$0xff] }
 0x3b7   :  { %v1196_v42 = vsel %vm1188_vm12, %v1184_v23, %v1192_v34  ;;  %v1435_v23 = vld [vmem:[#allocation8 + $0x60] sm:$0xff]  ;;  %v1430_v27 = vld [vmem:[#allocation8 + $0x38] sm:$0xff]  ;;  %v1425_v34 = vld [vmem:[#allocation8 + $0x10] sm:$0xff] }
 0x3b8   :  { %v1194_v35 = vmul.f32 0.2, %v1186_v30  ;;  %v1185_v36 = vadd.f32 %v1175_v33, %v895_v28  ;;  %vm1190_vm13 = vcmp.gt.f32.partialorder %v1186_v30, 0.0  ;;  %v1195_v41 = vsel %vm1187_vm11, %v1183_v24, %v1191_v29  ;;  %v1433_v24 = vld [vmem:[#allocation8 + $0x50] sm:$0xff]  ;;  %v1428_v29 = vld [vmem:[#allocation8 + $0x28] sm:$0xff]  ;;  %v1426_v33 = vld [vmem:[#allocation8 + $0x18] sm:$0xff] }
 0x3b9   :  { %v1199_v46 = vmax.f32 %v1195_v41, %v1196_v42  ;;  %v1429_v28 = vld [vmem:[#allocation8 + $0x30] sm:$0xff] }
 0x3ba   :  { %v1193_v39 = vmul.f32 0.2, %v1185_v36  ;;  %vm1189_vm14 = vcmp.gt.f32.partialorder %v1185_v36, 0.0  ;;  %v1198_v44 = vsel %vm1190_vm13, %v1186_v30, %v1194_v35  ;;  %v1427_v30 = vld [vmem:[#allocation8 + $0x20] sm:$0xff]  ;;  %v1424_v35 = vld [vmem:[#allocation8 + $0x8] sm:$0xff] }
 0x3bc   :  { %v1197_v43 = vsel %vm1189_vm14, %v1185_v36, %v1193_v39  ;;  %v1423_v36 = vld [vmem:[#allocation8] sm:$0xff]  ;;  %v1471_v39 = vld [vmem:[#allocation11 + $0x78] sm:$0xff] }
 0x3bd   :  { %v1200_v47 = vmax.f32 %v1197_v43, %v1198_v44 }
 0x3bf   :  { %v1201_v49 = vmax.f32 %v1199_v46, %v1200_v47  ;;  %v1451_v46 = vld [vmem:[#allocation10 + $0x58] sm:$0xff]  ;;  %v1450_v47 = vld [vmem:[#allocation10 + $0x50] sm:$0xff] }
 0x3c1   :  { %1202 = vmax.xlane.f32.xlu0 %v1201_v49  ;;  %v1449_v49 = vld [vmem:[#allocation10 + $0x48] sm:$0xff] }
 0x44a   :  { %v1203_v51 = vpop.xlane.xlu0 %1202 }
 0x44b   :  { %v1204_v54 = vrot.slane %v1203_v51, 4 }
 0x44d   :  { %v1205_v55 = vmax.f32 %v1203_v51, %v1204_v54  ;;  %v1448_v51 = vld [vmem:[#allocation10 + $0x40] sm:$0xff]  ;;  %v1447_v54 = vld [vmem:[#allocation10 + $0x38] sm:$0xff] }
 0x44f   :  { %v1206_v57 = vrot.slane %v1205_v55, 2 }
 0x451   :  { %v1207_v59 = vmax.f32 %v1205_v55, %v1206_v57  ;;  %v1446_v55 = vld [vmem:[#allocation10 + $0x30] sm:$0xff]  ;;  %v1445_v57 = vld [vmem:[#allocation10 + $0x28] sm:$0xff] }
 0x453   :  { %v1208_v53 = vrot.slane %v1207_v59, 1 }
 0x455   :  { %v1209_v56 = vmax.f32 %v1207_v59, %v1208_v53  ;;  %v1444_v59 = vld [vmem:[#allocation10 + $0x20] sm:$0xff]  ;;  %v1443_v53 = vld [vmem:[#allocation10 + $0x18] sm:$0xff] }
 0x457   :  { %2962 = vpush %v1209_v56  ;;  %v1442_v56 = vld [vmem:[#allocation10 + $0x10] sm:$0xff] }
 0x488   :  { %s2963_s11 = spop %2962 }
 0x489   :  { %v1211_v63 = vstv %s2963_s11 }
 0x48a   :  { %v1214_v1 = vsub.f32 %v1197_v43, %v1211_v63  ;;  %v1215_v2 = vsub.f32 %v1198_v44, %v1211_v63  ;;  %v1213_v4 = vsub.f32 %v1196_v42, %v1211_v63  ;;  %v1212_v10 = vsub.f32 %v1195_v41, %v1211_v63  ;;  %v1455_v41 = vld [vmem:[#allocation10 + $0x78] sm:$0xff]  ;;  %v1454_v42 = vld [vmem:[#allocation10 + $0x70] sm:$0xff]  ;;  %v1453_v43 = vld [vmem:[#allocation10 + $0x68] sm:$0xff] }
 0x48b   :  { %v1452_v44 = vld [vmem:[#allocation10 + $0x60] sm:$0xff] }
 0x48c   :  { %v1220_v6 = vmul.f32 1.442695, %v1214_v1  ;;  %v1222_v12 = vmul.f32 1.442695, %v1215_v2  ;;  %v1218_v13 = vmul.f32 1.442695, %v1213_v4 }
 0x48d   :  { %v1216_v14 = vmul.f32 1.442695, %v1212_v10 }
 0x48e   :  { %2984 = vpow2.f32 %v1220_v6 }
 0x48f   :  { %2986 = vpow2.f32 %v1222_v12 }
 0x490   :  { %2988 = vpow2.f32 %v1218_v13 }
 0x491   :  { %2990 = vpow2.f32 %v1216_v14 }
 0x49b   :  { %v2985_v15 = vpop.eup %2984 }
 0x49c   :  { %v2987_v16 = vpop.eup %2986  ;;  %v1226_v19 = vmul.f32 %v2985_v15, %v3590_v11  ;;  %v1437_v11 = vld [vmem:[#allocation8 + $0x70] sm:$0xff] }
 0x49d   :  { %2756 = vmatprep.subr.mxu0 %v2987_v16  ;;  %v1227_v17 = vmul.f32 %v2987_v16, %v3588_v9  ;;  %v2989_v18 = vpop.eup %2988 }
 0x49e   :  { %2757 = vmatpush3.msra.mxu0 %v2987_v16  ;;  %v2991_v20 = vpop.eup %2990  ;;  %v1225_v21 = vmul.f32 %v2989_v18, %v3584_v3  ;;  %v1436_v3 = vld [vmem:[#allocation8 + $0x68] sm:$0xff] }
 0x49f   :  { %2745 = vmatprep.subr.mxu1 %v1227_v17  ;;  %2758 = vmatprep.subr.mxu0 %v2985_v15  ;;  %v1224_v9 = vmul.f32 %v2991_v20, %v3586_v5  ;;  %v1434_v5 = vld [vmem:[#allocation8 + $0x58] sm:$0xff] }
 0x4a0   :  { %2746 = vmatpush3.msra.mxu1 %v1227_v17  ;;  %2759 = vmatpush3.msra.mxu0 %v2985_v15 }
 0x4a1   :  { %2747 = vmatprep.subr.mxu1 %v1226_v19  ;;  %2760 = vmatprep.subr.mxu0 %v2989_v18 }
 0x4a2   :  { %2748 = vmatpush3.msra.mxu1 %v1226_v19  ;;  %2761 = vmatpush3.msra.mxu0 %v2989_v18  ;;  %v1470_v18 = vld [vmem:[#allocation11 + $0x70] sm:$0xff]  ;;  %v1469_v19 = vld [vmem:[#allocation11 + $0x68] sm:$0xff] }
 0x4a3   :  { %2749 = vmatprep.subr.mxu1 %v1225_v21  ;;  %2762 = vmatprep.subr.mxu0 %v2991_v20 }
 0x4a4   :  { %2750 = vmatpush3.msra.mxu1 %v1225_v21  ;;  %2763 = vmatpush3.msra.mxu0 %v2991_v20  ;;  %v1468_v20 = vld [vmem:[#allocation11 + $0x60] sm:$0xff]  ;;  %v1467_v21 = vld [vmem:[#allocation11 + $0x58] sm:$0xff] }
 0x4a5   :  { %2751 = vmatprep.subr.mxu1 %v1224_v9  ;;  %2765 = vmatmul.mubr.msk.f32.vlgmr.msra.gmra.mxu0 %vm1260_vm15, %v3604_v22 }
 0x4a6   :  { %2752 = vmatpush3.msra.mxu1 %v1224_v9  ;;  %2802 = vmatprep.subr.mxu0 %v1455_v41  ;;  %v1464_v9 = vld [vmem:[#allocation11 + $0x40] sm:$0xff] }
 0x4a7   :  { %2754 = vmatmul.mubr.msk.f32.vlgmr.msra.gmra.mxu1 %vm1260_vm15, %v3604_v22  ;;  %2767 = vmatprep.subr.mxu1 %v1438_v62 }
 0x4a8   :  { %2768 = vmatpush3.msra.mxu1 %v1438_v62  ;;  %2803 = vmatpush3.msra.mxu0 %v1455_v41  ;;  %v1463_v62 = vld [vmem:[#allocation11 + $0x38] sm:$0xff]  ;;  %v1485_v41 = vld [vmem:[#allocation13 + $0x68] sm:$0xff] }
 0x4a9   :  { %2769 = vmatprep.subr.mxu1 %v1437_v11  ;;  %2804 = vmatprep.subr.mxu0 %v1454_v42 }
 0x4aa   :  { %2770 = vmatpush3.msra.mxu1 %v1437_v11  ;;  %2805 = vmatpush3.msra.mxu0 %v1454_v42  ;;  %v1462_v11 = vld [vmem:[#allocation11 + $0x30] sm:$0xff]  ;;  %v1484_v42 = vld [vmem:[#allocation13 + $0x60] sm:$0xff] }
 0x4ab   :  { %2771 = vmatprep.subr.mxu1 %v1436_v3  ;;  %2806 = vmatprep.subr.mxu0 %v1453_v43 }
 0x4ac   :  { %2772 = vmatpush3.msra.mxu1 %v1436_v3  ;;  %2807 = vmatpush3.msra.mxu0 %v1453_v43  ;;  %v1461_v3 = vld [vmem:[#allocation11 + $0x28] sm:$0xff]  ;;  %v1483_v43 = vld [vmem:[#allocation13 + $0x58] sm:$0xff] }
 0x4ad   :  { %2773 = vmatprep.subr.mxu1 %v1435_v23  ;;  %2808 = vmatprep.subr.mxu0 %v1452_v44 }
 0x4ae   :  { %2774 = vmatpush3.msra.mxu1 %v1435_v23  ;;  %2809 = vmatpush3.msra.mxu0 %v1452_v44  ;;  %v1460_v23 = vld [vmem:[#allocation11 + $0x20] sm:$0xff]  ;;  %v1481_v44 = vld [vmem:[#allocation13 + $0x48] sm:$0xff] }
 0x4af   :  { %2775 = vmatprep.subr.mxu1 %v1434_v5  ;;  %2810 = vmatprep.subr.mxu0 %v1451_v46 }
 0x4b0   :  { %2776 = vmatpush3.msra.mxu1 %v1434_v5  ;;  %2811 = vmatpush3.msra.mxu0 %v1451_v46  ;;  %v1459_v5 = vld [vmem:[#allocation11 + $0x18] sm:$0xff]  ;;  %v1480_v46 = vld [vmem:[#allocation13 + $0x40] sm:$0xff] }
 0x4b1   :  { %2777 = vmatprep.subr.mxu1 %v1433_v24  ;;  %2812 = vmatprep.subr.mxu0 %v1450_v47 }
 0x4b2   :  { %2778 = vmatpush3.msra.mxu1 %v1433_v24  ;;  %2813 = vmatpush3.msra.mxu0 %v1450_v47  ;;  %v1458_v24 = vld [vmem:[#allocation11 + $0x10] sm:$0xff]  ;;  %v1479_v47 = vld [vmem:[#allocation13 + $0x38] sm:$0xff] }
 0x4b3   :  { %2779 = vmatprep.subr.mxu1 %v1432_v25  ;;  %2814 = vmatprep.subr.mxu0 %v1449_v49 }
 0x4b4   :  { %2780 = vmatpush3.msra.mxu1 %v1432_v25  ;;  %2815 = vmatpush3.msra.mxu0 %v1449_v49  ;;  %v1457_v25 = vld [vmem:[#allocation11 + $0x8] sm:$0xff]  ;;  %v1478_v49 = vld [vmem:[#allocation13 + $0x30] sm:$0xff] }
 0x4b5   :  { %2781 = vmatprep.subr.mxu1 %v1431_v61  ;;  %2816 = vmatprep.subr.mxu0 %v1448_v51 }
 0x4b6   :  { %2782 = vmatpush3.msra.mxu1 %v1431_v61  ;;  %2817 = vmatpush3.msra.mxu0 %v1448_v51  ;;  %v1441_v61 = vld [vmem:[#allocation10 + $0x8] sm:$0xff] }
 0x4b7   :  { %2783 = vmatprep.subr.mxu1 %v1430_v27  ;;  %2818 = vmatprep.subr.mxu0 %v1447_v54  ;;  %v1477_v51 = vld [vmem:[#allocation13 + $0x28] sm:$0xff] }
 0x4b8   :  { %2784 = vmatpush3.msra.mxu1 %v1430_v27  ;;  %2819 = vmatpush3.msra.mxu0 %v1447_v54  ;;  %v1456_v27 = vld [vmem:[#allocation11] sm:$0xff] }
 0x4b9   :  { %2785 = vmatprep.subr.mxu1 %v1429_v28  ;;  %2820 = vmatprep.subr.mxu0 %v1446_v55  ;;  %v1476_v54 = vld [vmem:[#allocation13 + $0x20] sm:$0xff] }
 0x4ba   :  { %2786 = vmatpush3.msra.mxu1 %v1429_v28  ;;  %2821 = vmatpush3.msra.mxu0 %v1446_v55  ;;  %v1440_v28 = vld [vmem:[#allocation10] sm:$0xff]  ;;  %v1475_v55 = vld [vmem:[#allocation13 + $0x18] sm:$0xff] }
 0x4bb   :  { %2787 = vmatprep.subr.mxu1 %v1428_v29  ;;  %2822 = vmatprep.subr.mxu0 %v1445_v57 }
 0x4bc   :  { %2788 = vmatpush3.msra.mxu1 %v1428_v29  ;;  %2823 = vmatpush3.msra.mxu0 %v1445_v57  ;;  %v1487_v29 = vld [vmem:[#allocation13 + $0x78] sm:$0xff]  ;;  %v1473_v57 = vld [vmem:[#allocation13 + $0x8] sm:$0xff] }
 0x4bd   :  { %2789 = vmatprep.subr.mxu1 %v1427_v30  ;;  %2824 = vmatprep.subr.mxu0 %v1444_v59 }
 0x4be   :  { %2790 = vmatpush3.msra.mxu1 %v1427_v30  ;;  %2825 = vmatpush3.msra.mxu0 %v1444_v59  ;;  %v2325_v30 = vld [vmem:[%s3698_s17] ss:$0 sm:$0xff] }
 0x4bf   :  { %2791 = vmatprep.subr.mxu1 %v1426_v33  ;;  %2826 = vmatprep.subr.mxu0 %v1443_v53  ;;  %v1472_v59 = vld [vmem:[#allocation13] sm:$0xff] }
 0x4c0   :  { %2792 = vmatpush3.msra.mxu1 %v1426_v33  ;;  %2827 = vmatpush3.msra.mxu0 %v1443_v53 }
 0x4c1   :  { %2793 = vmatprep.subr.mxu1 %v1425_v34  ;;  %2828 = vmatprep.subr.mxu0 %v1442_v56 }
 0x4c2   :  { %2794 = vmatpush3.msra.mxu1 %v1425_v34  ;;  %2829 = vmatpush3.msra.mxu0 %v1442_v56 }
 0x4c3   :  { %2795 = vmatprep.subr.mxu1 %v1424_v35  ;;  %2830 = vmatprep.subr.mxu0 %v1441_v61 }
 0x4c4   :  { %2796 = vmatpush3.msra.mxu1 %v1424_v35  ;;  %2831 = vmatpush3.msra.mxu0 %v1441_v61 }
 0x4c5   :  { %2797 = vmatprep.subr.mxu1 %v1423_v36  ;;  %2832 = vmatprep.subr.mxu0 %v1440_v28 }
 0x4c6   :  { %2798 = vmatpush3.msra.mxu1 %v1423_v36  ;;  %2833 = vmatpush3.msra.mxu0 %v1440_v28 }
 0x4c7   :  { %2837 = vmatprep.subr.mxu1 %v1471_v39  ;;  %2872 = vmatprep.subr.mxu0 %v1487_v29 }
 0x565   :  { %v2766_v63 = vpop.f32.mrf.mxu0 }
 0x566   :  { %v1414_v1 = vadd.f32 1e-16, %v2766_v63 }
 0x567   :  { %v1408_v2 = vpop.f32.mrf.mxu0  ;;  %v2755_v6 = vpop.f32.mrf.mxu1 }
 0x568   :  { %2992 = vrcp.f32 %v1414_v1  ;;  %v1409_v4 = vadd.f32 1e-16, %v1408_v2 }
 0x569   :  { %v1333_v14 = vpop.f32.mrf.mxu1 }
 0x56a   :  { %2994 = vrcp.f32 %v1409_v4 }
 0x575   :  { %v2993_v10 = vpop.eup %2992 }
 0x576   :  { %v1420_v13 = vmul.f32 %v2993_v10, %v2755_v6 }
 0x577   :  { %v2995_v12 = vpop.eup %2994 }
 0x578   :  { %v1419_v15 = vmul.f32 %v2995_v12, %v1333_v14  ;;  %v3615_v17 = vadd.f32 %v1420_v13, %v3446_v8  ;;  %v1465_v8 = vld [vmem:[#allocation11 + $0x48] sm:$0xff] }
 0x57a   :  { %v3612_v16 = vadd.f32 %v1419_v15, %v3444_v7  ;;  %v1466_v7 = vld [vmem:[#allocation11 + $0x50] sm:$0xff] }
 0x57c   :  { %2799 = vmatprep.mubr.f32.mxu1 %v3612_v16 }
 0x57d   :  { %2800 = vmatmul.mubr.f32.vlgmr.msra.gmra.mxu1 %v3615_v17 }
 0x57e   :  { %2838 = vmatpush3.msra.mxu1 %v1471_v39  ;;  %v1486_v39 = vld [vmem:[#allocation13 + $0x70] sm:$0xff] }
 0x57f   :  { %2839 = vmatprep.subr.mxu1 %v1470_v18 }
 0x580   :  { %2840 = vmatpush3.msra.mxu1 %v1470_v18 }
 0x581   :  { %2841 = vmatprep.subr.mxu1 %v1469_v19 }
 0x582   :  { %2842 = vmatpush3.msra.mxu1 %v1469_v19 }
 0x583   :  { %2843 = vmatprep.subr.mxu1 %v1468_v20 }
 0x584   :  { %2844 = vmatpush3.msra.mxu1 %v1468_v20 }
 0x585   :  { %2845 = vmatprep.subr.mxu1 %v1467_v21 }
 0x586   :  { %2846 = vmatpush3.msra.mxu1 %v1467_v21 }
 0x587   :  { %2847 = vmatprep.subr.mxu1 %v1466_v7 }
 0x588   :  { %2848 = vmatpush3.msra.mxu1 %v1466_v7 }
 0x589   :  { %2849 = vmatprep.subr.mxu1 %v1465_v8 }
 0x58a   :  { %2850 = vmatpush3.msra.mxu1 %v1465_v8 }
 0x58b   :  { %2851 = vmatprep.subr.mxu1 %v1464_v9 }
 0x58c   :  { %2852 = vmatpush3.msra.mxu1 %v1464_v9 }
 0x58d   :  { %2853 = vmatprep.subr.mxu1 %v1463_v62 }
 0x58e   :  { %2854 = vmatpush3.msra.mxu1 %v1463_v62 }
 0x58f   :  { %2855 = vmatprep.subr.mxu1 %v1462_v11 }
 0x590   :  { %2856 = vmatpush3.msra.mxu1 %v1462_v11 }
 0x591   :  { %2857 = vmatprep.subr.mxu1 %v1461_v3 }
 0x592   :  { %2858 = vmatpush3.msra.mxu1 %v1461_v3 }
 0x593   :  { %2859 = vmatprep.subr.mxu1 %v1460_v23 }
 0x594   :  { %2860 = vmatpush3.msra.mxu1 %v1460_v23 }
 0x595   :  { %2861 = vmatprep.subr.mxu1 %v1459_v5 }
 0x596   :  { %2862 = vmatpush3.msra.mxu1 %v1459_v5 }
 0x597   :  { %2863 = vmatprep.subr.mxu1 %v1458_v24 }
 0x598   :  { %2864 = vmatpush3.msra.mxu1 %v1458_v24 }
 0x599   :  { %2865 = vmatprep.subr.mxu1 %v1457_v25 }
 0x59a   :  { %2866 = vmatpush3.msra.mxu1 %v1457_v25 }
 0x59b   :  { %2867 = vmatprep.subr.mxu1 %v1456_v27 }
 0x59c   :  { %2868 = vmatpush3.msra.mxu1 %v1456_v27 }
 0x63d   :  { %v2801_v33 = vpop.f32.mrf.mxu1 }
 0x63e   :  { %v1567_v34 = vadd.f32 %v2801_v33, %v2325_v30 }
 0x63f   :  { %v1561_v35 = vpop.f32.mrf.mxu1 }
 0x640   :  { %v1562_v36 = vadd.f32 %v2325_v30, %v1561_v35  ;;  %2910 = vmatprep.subr.mxu1 %v1567_v34 }
 0x642   :  { %2834 = vmatprep.mubr.f32.mxu0 %v1562_v36  ;;  %2869 = vmatprep.mubr.f32.mxu1 %v1562_v36 }
 0x643   :  { %2835 = vmatmul.mubr.f32.vlgmr.msra.gmra.mxu0 %v1567_v34  ;;  %2870 = vmatmul.mubr.f32.vlgmr.msra.gmra.mxu1 %v1567_v34 }
 0x644   :  { %2873 = vmatpush3.msra.mxu0 %v1487_v29  ;;  %2911 = vmatpush3.msra.mxu1 %v1567_v34 }
 0x645   :  { %2874 = vmatprep.subr.mxu0 %v1486_v39  ;;  %2904 = vmatprep.mubr.f32.mxu0 %v3510_v0  ;;  %v1482_v0 = vld [vmem:[#allocation13 + $0x50] sm:$0xff] }
 0x646   :  { %2912 = vmatprep.subr.mxu1 %v1562_v36  ;;  %2914 = vmatprep.mubr.msk.f32.mxu1 %vm903_vm4, %v3514_v26 }
 0x647   :  { %2875 = vmatpush3.msra.mxu0 %v1486_v39  ;;  %2913 = vmatpush3.msra.mxu1 %v1562_v36 }
 0x648   :  { %2876 = vmatprep.subr.mxu0 %v1485_v41  ;;  %2915 = vmatmul.mubr.msk.f32.vlgmr.msra.gmra.mxu1 %vm903_vm4, %v3523_v32 }
 0x649   :  { %2877 = vmatpush3.msra.mxu0 %v1485_v41  ;;  %2917 = vmatprep.mubr.msk.f32.mxu1 %vm903_vm4, %v3518_v31 }
 0x64a   :  { %2878 = vmatprep.subr.mxu0 %v1484_v42 }
 0x64b   :  { %2879 = vmatpush3.msra.mxu0 %v1484_v42 }
 0x64c   :  { %2880 = vmatprep.subr.mxu0 %v1483_v43  ;;  %2918 = vmatmul.mubr.msk.f32.gmra.mxu1 %vm903_vm4, %v3530_v37 }
 0x64d   :  { %2881 = vmatpush3.msra.mxu0 %v1483_v43  ;;  %2934 = vmatprep.mubr.msk.f32.mxu1 %vm903_vm4, %v3534_v38  ;;  %v1474_v38 = vld [vmem:[#allocation13 + $0x10] sm:$0xff] }
 0x64e   :  { %2882 = vmatprep.subr.mxu0 %v1482_v0 }
 0x64f   :  { %2883 = vmatpush3.msra.mxu0 %v1482_v0 }
 0x650   :  { %2884 = vmatprep.subr.mxu0 %v1481_v44 }
 0x651   :  { %2885 = vmatpush3.msra.mxu0 %v1481_v44 }
 0x652   :  { %2886 = vmatprep.subr.mxu0 %v1480_v46 }
 0x653   :  { %2887 = vmatpush3.msra.mxu0 %v1480_v46 }
 0x654   :  { %2888 = vmatprep.subr.mxu0 %v1479_v47 }
 0x655   :  { %2889 = vmatpush3.msra.mxu0 %v1479_v47 }
 0x656   :  { %2890 = vmatprep.subr.mxu0 %v1478_v49 }
 0x657   :  { %2891 = vmatpush3.msra.mxu0 %v1478_v49 }
 0x658   :  { %2892 = vmatprep.subr.mxu0 %v1477_v51 }
 0x659   :  { %2893 = vmatpush3.msra.mxu0 %v1477_v51 }
 0x65a   :  { %2894 = vmatprep.subr.mxu0 %v1476_v54 }
 0x65b   :  { %2895 = vmatpush3.msra.mxu0 %v1476_v54 }
 0x65c   :  { %2896 = vmatprep.subr.mxu0 %v1475_v55 }
 0x65d   :  { %2897 = vmatpush3.msra.mxu0 %v1475_v55 }
 0x65e   :  { %2898 = vmatprep.subr.mxu0 %v1474_v38 }
 0x65f   :  { %2899 = vmatpush3.msra.mxu0 %v1474_v38 }
 0x660   :  { %2900 = vmatprep.subr.mxu0 %v1473_v57 }
 0x661   :  { %2901 = vmatpush3.msra.mxu0 %v1473_v57 }
 0x662   :  { %2902 = vmatprep.subr.mxu0 %v1472_v59 }
 0x663   :  { %2903 = vmatpush3.msra.mxu0 %v1472_v59 }
 0x664   :  { %2905 = vmatmul.mubr.f32.vlgmr.msra.gmra.mxu0 %v3557_v58 }
 0x665   :  { %2907 = vmatprep.mubr.f32.mxu0 %v3562_v60 }
 0x668   :  { %2908 = vmatmul.mubr.f32.gmra.mxu0 %v3566_v52 }
 0x669   :  { %2924 = vmatprep.mubr.msk.f32.mxu0 %vm903_vm4, %v3514_v26 }
 0x703   :  { %v2836_v53 = vpop.f32.mrf.mxu0  ;;  %v2871_v56 = vpop.f32.mrf.mxu1 }
 0x704   :  { %2920 = vmatprep.subr.mxu0 %v2871_v56  ;;  %2930 = vmatprep.subr.mxu1 %v2836_v53 }
 0x705   :  { %v1636_v63 = vpop.f32.mrf.mxu0  ;;  %v1711_v1 = vpop.f32.mrf.mxu1  ;;  %2921 = vmatpush3.msra.mxu0 %v2871_v56  ;;  %2931 = vmatpush3.msra.mxu1 %v2836_v53 }
 0x706   :  { %2922 = vmatprep.subr.mxu0 %v1711_v1  ;;  %2932 = vmatprep.subr.mxu1 %v1636_v63 }
 0x707   :  { %2923 = vmatpush3.msra.mxu0 %v1711_v1  ;;  %2933 = vmatpush3.msra.mxu1 %v1636_v63 }
 0x708   :  { %2925 = vmatmul.mubr.msk.f32.vlgmr.msra.gmra.mxu0 %vm903_vm4, %v3523_v32  ;;  %2935 = vmatmul.mubr.msk.f32.vlgmr.msra.gmra.mxu1 %vm903_vm4, %v3537_v40  ;;  %v3654_v26 = vpop.f32.mrf.mxu1 }
 0x709   :  { %2927 = vmatprep.mubr.msk.f32.mxu0 %vm903_vm4, %v3518_v31  ;;  %2937 = vmatprep.mubr.msk.f32.mxu1 %vm903_vm4, %v3545_v45 }
 0x70a   :  { %v3656_v40 = vpop.f32.mrf.mxu1 }
 0x70c   :  { %2928 = vmatmul.mubr.msk.f32.gmra.mxu0 %vm903_vm4, %v3530_v37  ;;  %2938 = vmatmul.mubr.msk.f32.gmra.mxu1 %vm903_vm4, %v3549_v48  ;;  %v3658_v58 = vpop.f32.mrf.mxu1  ;;  %v2326_v48 = vld [vmem:[%s3702_s21] ss:$0 sm:$0xff] }
 0x70d   :  { %2948 = vmatprep.mubr.msk.f32.mxu0 %vm1260_vm15, %v3595_v50  ;;  %2959 = vmatprep.mubr.msk.f32.mxu1 %vm1260_vm15, %v3595_v50 }
 0x70e   :  { %v3660_v60 = vpop.f32.mrf.mxu1 }
 0x724   :  { %v2906_v32 = vpop.f32.mrf.mxu0 }
 0x725   :  { %v1798_v10 = vadd.f32 %v2906_v32, %v2326_v48 }
 0x726   :  { %v1792_v31 = vpop.f32.mrf.mxu0 }
 0x727   :  { %v1793_v12 = vadd.f32 %v2326_v48, %v1792_v31 }
 0x728   :  { %v2909_v45 = vpop.f32.mrf.mxu0 }
 0x729   :  { %v1808_v18 = vadd.f32 %v2909_v45, %v2326_v48 }
 0x72a   :  { %v1802_v37 = vpop.f32.mrf.mxu0 }
 0x72b   :  { %v1803_v9 = vadd.f32 %v2326_v48, %v1802_v37 }
 0x7c8   :  { %v2926_v52 = vpop.f32.mrf.mxu0  ;;  %v2936_v2 = vpop.f32.mrf.mxu1 }
 0x7c9   :  { %v2053_v4 = vadd.f32 %v2936_v2, %v2926_v52 }
 0x7ca   :  { %v1962_v50 = vpop.f32.mrf.mxu0  ;;  %v2047_v6 = vpop.f32.mrf.mxu1 }
 0x7cb   :  { %v2048_v13 = vadd.f32 %v2047_v6, %v1962_v50  ;;  %v2067_v19 = vadd.f32 %v2053_v4, %v1798_v10 }
 0x7cc   :  { %v2929_v14 = vpop.f32.mrf.mxu0  ;;  %v2939_v15 = vpop.f32.mrf.mxu1 }
 0x7cd   :  { %v2066_v20 = vadd.f32 %v2048_v13, %v1793_v12  ;;  %v2063_v21 = vadd.f32 %v2939_v15, %v2929_v14  ;;  %v2075_v23 = vmul.f32 0.2, %v2067_v19  ;;  %vm2071_vm1 = vcmp.gt.f32.partialorder %v2067_v19, 0.0 }
 0x7ce   :  { %v1972_v7 = vpop.f32.mrf.mxu0  ;;  %v2057_v8 = vpop.f32.mrf.mxu1 }
 0x7cf   :  { %v2074_v62 = vmul.f32 0.2, %v2066_v20  ;;  %v2069_v11 = vadd.f32 %v2063_v21, %v1808_v18  ;;  %v2058_v3 = vadd.f32 %v2057_v8, %v1972_v7  ;;  %vm2070_vm0 = vcmp.gt.f32.partialorder %v2066_v20, 0.0 }
 0x7d0   :  { %v2079_v27 = vsel %vm2071_vm1, %v2067_v19, %v2075_v23 }
 0x7d1   :  { %v2077_v5 = vmul.f32 0.2, %v2069_v11  ;;  %v2068_v24 = vadd.f32 %v2058_v3, %v1803_v9  ;;  %vm2073_vm2 = vcmp.gt.f32.partialorder %v2069_v11, 0.0  ;;  %v2078_v61 = vsel %vm2070_vm0, %v2066_v20, %v2074_v62 }
 0x7d2   :  { %v2082_v30 = vmax.f32 %v2078_v61, %v2079_v27 }
 0x7d3   :  { %v2076_v25 = vmul.f32 0.2, %v2068_v24  ;;  %vm2072_vm3 = vcmp.gt.f32.partialorder %v2068_v24, 0.0  ;;  %v2081_v29 = vsel %vm2073_vm2, %v2069_v11, %v2077_v5 }
 0x7d5   :  { %v2080_v28 = vsel %vm2072_vm3, %v2068_v24, %v2076_v25 }
 0x7d6   :  { %v2083_v33 = vmax.f32 %v2080_v28, %v2081_v29 }
 0x7d8   :  { %v2084_v34 = vmax.f32 %v2082_v30, %v2083_v33 }
 0x7da   :  { %2085 = vmax.xlane.f32.xlu0 %v2084_v34 }
 0x863   :  { %v2086_v35 = vpop.xlane.xlu0 %2085 }
 0x864   :  { %v2087_v36 = vrot.slane %v2086_v35, 4 }
 0x866   :  { %v2088_v39 = vmax.f32 %v2086_v35, %v2087_v36 }
 0x868   :  { %v2089_v41 = vrot.slane %v2088_v39, 2 }
 0x86a   :  { %v2090_v42 = vmax.f32 %v2088_v39, %v2089_v41 }
 0x86c   :  { %v2091_v43 = vrot.slane %v2090_v42, 1 }
 0x86e   :  { %v2092_v0 = vmax.f32 %v2090_v42, %v2091_v43 }
 0x870   :  { %2964 = vpush %v2092_v0 }
 0x8a1   :  { %s2965_s21 = spop %2964 }
 0x8a2   :  { %v2094_v44 = vstv %s2965_s21 }
 0x8a3   :  { %v2097_v46 = vsub.f32 %v2080_v28, %v2094_v44  ;;  %v2098_v47 = vsub.f32 %v2081_v29, %v2094_v44  ;;  %v2096_v49 = vsub.f32 %v2079_v27, %v2094_v44  ;;  %v2095_v54 = vsub.f32 %v2078_v61, %v2094_v44 }
 0x8a5   :  { %v2103_v51 = vmul.f32 1.442695, %v2097_v46  ;;  %v2105_v55 = vmul.f32 1.442695, %v2098_v47  ;;  %v2101_v38 = vmul.f32 1.442695, %v2096_v49 }
 0x8a6   :  { %v2099_v57 = vmul.f32 1.442695, %v2095_v54 }
 0x8a7   :  { %2996 = vpow2.f32 %v2103_v51 }
 0x8a8   :  { %2998 = vpow2.f32 %v2105_v55 }
 0x8a9   :  { %3000 = vpow2.f32 %v2101_v38 }
 0x8aa   :  { %3002 = vpow2.f32 %v2099_v57 }
 0x8b4   :  { %v2997_v59 = vpop.eup %2996 }
 0x8b5   :  { %v2999_v53 = vpop.eup %2998  ;;  %v2109_v1 = vmul.f32 %v2997_v59, %v3660_v60 }
 0x8b6   :  { %2951 = vmatprep.subr.mxu1 %v2999_v53  ;;  %v2110_v56 = vmul.f32 %v2999_v53, %v3658_v58  ;;  %v3001_v63 = vpop.eup %3000 }
 0x8b7   :  { %2952 = vmatpush3.msra.mxu1 %v2999_v53  ;;  %v3003_v32 = vpop.eup %3002  ;;  %v2108_v31 = vmul.f32 %v3001_v63, %v3654_v26 }
 0x8b8   :  { %2940 = vmatprep.subr.mxu0 %v2110_v56  ;;  %2953 = vmatprep.subr.mxu1 %v2997_v59  ;;  %v2107_v45 = vmul.f32 %v3003_v32, %v3656_v40 }
 0x8b9   :  { %2941 = vmatpush3.msra.mxu0 %v2110_v56  ;;  %2954 = vmatpush3.msra.mxu1 %v2997_v59 }
 0x8ba   :  { %2942 = vmatprep.subr.mxu0 %v2109_v1  ;;  %2955 = vmatprep.subr.mxu1 %v3001_v63 }
 0x8bb   :  { %2943 = vmatpush3.msra.mxu0 %v2109_v1  ;;  %2956 = vmatpush3.msra.mxu1 %v3001_v63 }
 0x8bc   :  { %2944 = vmatprep.subr.mxu0 %v2108_v31  ;;  %2957 = vmatprep.subr.mxu1 %v3003_v32 }
 0x8bd   :  { %2945 = vmatpush3.msra.mxu0 %v2108_v31  ;;  %2958 = vmatpush3.msra.mxu1 %v3003_v32 }
 0x8be   :  { %2946 = vmatprep.subr.mxu0 %v2107_v45  ;;  %2960 = vmatmul.mubr.msk.f32.vlgmr.msra.gmra.mxu1 %vm1260_vm15, %v3604_v22 }
 0x8bf   :  { %2947 = vmatpush3.msra.mxu0 %v2107_v45 }
 0x8c0   :  { %2949 = vmatmul.mubr.msk.f32.vlgmr.msra.gmra.mxu0 %vm1260_vm15, %v3604_v22 }
 0x97e   :  { %v2961_v58 = vpop.f32.mrf.mxu1 }
 0x97f   :  { %v2258_v60 = vadd.f32 1e-16, %v2961_v58 }
 0x980   :  { %v2252_v37 = vpop.f32.mrf.mxu1  ;;  %v2950_v48 = vpop.f32.mrf.mxu0 }
 0x981   :  { %3004 = vrcp.f32 %v2258_v60  ;;  %v2253_v26 = vadd.f32 1e-16, %v2252_v37 }
 0x982   :  { %v2177_v4 = vpop.f32.mrf.mxu0 }
 0x983   :  { %3006 = vrcp.f32 %v2253_v26 }
 0x98e   :  { %v3005_v52 = vpop.eup %3004 }
 0x98f   :  { %v2264_v2 = vmul.f32 %v3005_v52, %v2950_v48 }
 0x990   :  { %v3007_v40 = vpop.eup %3006 }
 0x991   :  { %v2266_v50 = vadd.f32 %v2264_v2, %v3615_v17  ;;  %v2263_v6 = vmul.f32 %v3007_v40, %v2177_v4 }
 0x993   :  { %2268 = vst [vmem:[#allocation14 + $0x8] sm:$0xff] %v2266_v50  ;;  %v2265_v10 = vadd.f32 %v2263_v6, %v3612_v16 }
 0x995   :  { %2267 = vst [vmem:[#allocation14] sm:$0xff] %v2265_v10 }
 0x996   :  { %3159 = shalt.err (!%p3156_p11)
}
 0x997   :  { %2280 = dma.vmem_to_hbm [thread:$0]  %s2275_s18, 256, %s3703_s22, [#allocation4], %s3180_s0, %s3180_s0, %s3181_s23  }
 0x998   :  { %3176 = dma.done.wait [#allocation4], 256  }
 0x999   :  { %3177 = vsyncadd [#allocation4], 4294967040 }
 0x99a   :  { %2284 = vsyncpa [#allocation3], 1 }
 0x99b   :  { %2285 = vsyncpa [#allocation6], 1 }
 0x99c   :  { %2286 = vsyncpa [#allocation9], 1 }
 0x99d   :  { %2287 = vsyncpa [#allocation12], 1 }
 0x99e   :  { %2288 = vsyncpa [#allocation4], 1 }

</bundles_post_ra>
